<compile_context>
chip_gen: v5e
topology: v5e:2x2
jax: 0.10.0
libtpu: 0.0.40
codegen_flags: <defaults>
</compile_context>

<pallas_src>
import functools

import jax
import jax.numpy as jnp
from jax import lax
from jax.experimental import pallas as pl
from jax.experimental.pallas import tpu as pltpu


# Static layer config: (name, stride).  Channel widths below.
_LAYER_CFG = (
    ("stem", 2),
    ("layer1", 1),
    ("layer2", 2),
    ("layer3", 2),
    ("layer4", 2),
)
_WIDTHS = {"stem": 8, "layer1": 8, "layer2": 16, "layer3": 32, "layer4": 64}


# ---------------------------------------------------------------------------
# Pallas kernel: 3x3 conv (+folded BN, ReLU) for one batch element, expressed
# as 9 tap matmuls over a flattened phase stack.
# ---------------------------------------------------------------------------
def _conv3x3_kernel(ph_ref, w_ref, scale_ref, bias_ref, mask_ref, o_ref,
                    *, taps, m):
    """Refs:
      ph_ref    (1, P, Cin_p, L) bf16  flattened phase stack (guarded)
      w_ref     (9, Cout, Cin_p) bf16  per-tap weight matrices
      scale_ref (Cout, 1)        f32   folded-BN scale (per-sublane)
      bias_ref  (Cout, 1)        f32   folded-BN bias
      mask_ref  (2, 1, M)        f32   [left-edge-ok, right-edge-ok] columns
      o_ref     (1, Cout, M)     f32   output, M = Ho*Wo on the lane axis
    """
    cout = w_ref.shape[1]
    left_ok = mask_ref[0]     # (1, M)
    right_ok = mask_ref[1]    # (1, M)

    acc = jnp.zeros((cout, m), jnp.float32)
    # 9 taps, statically unrolled; each is a contiguous lane-dim slice.
    for t, p, start, mask_kind in taps:
        x = ph_ref[0, p, :, start:start + m]                # (Cin_p, M) bf16
        part = jnp.dot(w_ref[t], x,                          # MXU, f32 accum
                       preferred_element_type=jnp.float32)   # (Cout, M)
        if mask_kind == 0:       # tap reads column wo-1 -> invalid at wo == 0
            part = part * left_ok
        elif mask_kind == 1:     # tap reads column wo+1 -> invalid at wo == Wo-1
            part = part * right_ok
        acc = acc + part

    y = acc * scale_ref[...] + bias_ref[...]                 # (Cout,1) bcast
    o_ref[0] = jnp.maximum(y, 0.0).astype(o_ref.dtype)


# ---------------------------------------------------------------------------
# Wrapper-side layout prep (cheap XLA: pad / strided slice / reshape only; no
# 9x im2col materialization anywhere).
# ---------------------------------------------------------------------------
def _phase_stack(x, stride):
    """Pad H by 1, polyphase-decompose for stride 2, flatten spatial dims.

    Returns (phases, Ho, Wo); phases: (N, P, Cin, 1 + phH*phW + 1) with a
    1-element zero guard on each end so every conv tap is a contiguous static
    slice along the lane axis inside the kernel.
    """
    n, c, h, w = x.shape
    xh = jnp.pad(x, ((0, 0), (0, 0), (1, 1), (0, 0)))     # pad H only
    if stride == 1:
        ho, wo = h, w
        ph = xh[:, None]                                   # (N, 1, C, H+2, W)
    elif stride == 2:
        assert h % 2 == 0 and w % 2 == 0, "stride-2 blocks expect even H, W"
        ho, wo = h // 2, w // 2
        ph = jnp.stack([xh[:, :, p::2, q::2]
                        for p in (0, 1) for q in (0, 1)], axis=1)
        # (N, 4, C, Ho+1, Wo); same total bytes as the input (no amplification)
    else:
        raise ValueError(f"unsupported stride {stride}")
    n_, p_, c_, ph_h, ph_w = ph.shape
    flat = ph.reshape(n_, p_, c_, ph_h * ph_w)
    flat = jnp.pad(flat, ((0, 0), (0, 0), (0, 0), (1, 1)))  # 1-elem guards
    return flat, ho, wo


def _make_taps(stride, ph_w):
    """Static tap schedule: (tap_idx, phase_idx, flat_start, mask_kind).

    mask_kind: None = always valid, 0 = mask wo==0, 1 = mask wo==Wo-1.
    flat_start includes the +1 front guard.
    """
    taps = []
    for kh in range(3):
        for kw in range(3):
            t = kh * 3 + kw
            if stride == 1:
                p = 0
                start = 1 + kh * ph_w + (kw - 1)
                mask = 0 if kw == 0 else (1 if kw == 2 else None)
            else:  # stride 2 polyphase: phase (kh%2, q), q=0 for kw==1 else 1
                q = 0 if kw == 1 else 1
                p = (kh % 2) * 2 + q
                dw = -1 if kw == 0 else 0
                start = 1 + (kh // 2) * ph_w + dw
                mask = 0 if kw == 0 else None
            taps.append((t, p, start, mask))
    return tuple(taps)


def _edge_masks(m, wo):
    col = jnp.arange(m, dtype=jnp.int32) % wo
    left_ok = (col != 0).astype(jnp.float32)
    right_ok = (col != wo - 1).astype(jnp.float32)
    return jnp.stack([left_ok, right_ok])[:, None, :]        # (2, 1, M)


def conv3x3_bn_relu(x, weight, scale, bias, stride):
    """conv3x3(pad=1, stride in {1,2}) + frozen-BN + ReLU.  NCHW in/out."""
    n, cin, h, w = x.shape
    cout = weight.shape[0]

    phases, ho, wo = _phase_stack(x, stride)                 # (N, P, Cin, L)
    m = ho * wo
    ph_w = w if stride == 1 else wo

    # Pad the contraction dim to a sublane multiple (zero rows are harmless).
    cin_p = max(8, ((cin + 7) // 8) * 8)
    if cin_p != cin:
        phases = jnp.pad(phases, ((0, 0), (0, 0), (0, cin_p - cin), (0, 0)))

    # (Cout, Cin, 3, 3) -> (kh, kw, Cout, Cin) -> (9, Cout, Cin_p)
    w_taps = weight.transpose(2, 3, 0, 1).reshape(9, cout, cin)
    if cin_p != cin:
        w_taps = jnp.pad(w_taps, ((0, 0), (0, 0), (0, cin_p - cin)))

    # bf16 operands, f32 accumulation.
    phases = phases.astype(jnp.bfloat16)
    w_taps = w_taps.astype(jnp.bfloat16)

    masks = _edge_masks(m, wo)
    scale2 = scale.reshape(cout, 1).astype(jnp.float32)
    bias2 = bias.reshape(cout, 1).astype(jnp.float32)

    p_dim, l_dim = phases.shape[1], phases.shape[3]
    taps = _make_taps(stride, ph_w)
    kernel = functools.partial(_conv3x3_kernel, taps=taps, m=m)

    out = pl.pallas_call(
        kernel,
        out_shape=jax.ShapeDtypeStruct((n, cout, m), jnp.float32),
        grid=(n,),
        in_specs=[
            pl.BlockSpec((1, p_dim, cin_p, l_dim), lambda i: (i, 0, 0, 0)),
            pl.BlockSpec((9, cout, cin_p), lambda i: (0, 0, 0)),
            pl.BlockSpec((cout, 1), lambda i: (0, 0)),
            pl.BlockSpec((cout, 1), lambda i: (0, 0)),
            pl.BlockSpec((2, 1, m), lambda i: (0, 0, 0)),
        ],
        out_specs=pl.BlockSpec((1, cout, m), lambda i: (i, 0, 0)),
        compiler_params=pltpu.CompilerParams(
            dimension_semantics=("parallel",),      # shards over v7x's 2 TCs
            vmem_limit_bytes=32 * 1024 * 1024,      # safe on v5e/v6e/v7x
        ),
    )(phases, w_taps, scale2, bias2, masks)

    # (N, Cout, Ho*Wo) -> NCHW: pure reshape, no transpose anywhere.
    return out.reshape(n, cout, ho, wo)


# ---------------------------------------------------------------------------
# Parameters (deterministic init) and BackboneBase.forward.
# ---------------------------------------------------------------------------
def make_backbone_params(key, in_channels=3):
    params = {}
    cin = in_channels
    for i, (name, _stride) in enumerate(_LAYER_CFG):
        cout = _WIDTHS[name]
        kw_, kb_ = jax.random.split(jax.random.fold_in(key, i))
        weight = 0.1 * jax.random.normal(kw_, (cout, cin, 3, 3), jnp.float32)
        # frozen BN folded: scale = gamma/sqrt(var+eps), bias = beta - mean*scale
        gamma = jnp.ones((cout,), jnp.float32)
        beta = 0.01 * jax.random.normal(kb_, (cout,), jnp.float32)
        mean = jnp.zeros((cout,), jnp.float32)
        var = jnp.ones((cout,), jnp.float32)
        scale = gamma / jnp.sqrt(var + 1e-5)
        bias = beta - mean * scale
        params[name] = dict(weight=weight, scale=scale, bias=bias)
        cin = cout
    return params


def backbone_base_forward(params, x, return_interm_layers=True):
    """Mirrors BackboneBase.forward: run body, return selected layers dict."""
    feats = {}
    h = x
    for name, stride in _LAYER_CFG:          # stride is static Python config
        p = params[name]
        h = conv3x3_bn_relu(h, p["weight"], p["scale"], p["bias"], stride)
        feats[name] = h
    if return_interm_layers:
        return_layers = {"layer1": "0", "layer2": "1", "layer3": "2",
                         "layer4": "3"}
    else:
        return_layers = {"layer4": "0"}
    return {o: feats[l] for l, o in return_layers.items()}


# ---------------------------------------------------------------------------
# Pure-JAX reference (lax conv, same bf16-input / f32-accumulate math).
# ---------------------------------------------------------------------------
def conv_block_ref(x, weight, scale, bias, stride):
    y = lax.conv_general_dilated(
        x.astype(jnp.bfloat16), weight.astype(jnp.bfloat16),
        window_strides=(stride, stride), padding=((1, 1), (1, 1)),
        dimension_numbers=("NCHW", "OIHW", "NCHW"),
        preferred_element_type=jnp.float32)
    y = y * scale[None, :, None, None] + bias[None, :, None, None]
    return jnp.maximum(y, 0.0)


def backbone_base_forward_ref(params, x, return_interm_layers=True):
    feats = {}
    h = x
    for name, stride in _LAYER_CFG:
        p = params[name]
        h = conv_block_ref(h, p["weight"], p["scale"], p["bias"], stride)
        feats[name] = h
    rl = ({"layer1": "0", "layer2": "1", "layer3": "2", "layer4": "3"}
          if return_interm_layers else {"layer4": "0"})
    return {o: feats[l] for l, o in rl.items()}


if __name__ == "__main__":
    key = jax.random.PRNGKey(0)
    kx, kp = jax.random.split(key)
    x = jax.random.normal(kx, (2, 3, 16, 16), jnp.float32)   # NCHW input
    params = make_backbone_params(kp, in_channels=3)

    fwd = jax.jit(functools.partial(backbone_base_forward,
                                    return_interm_layers=True))
    out = fwd(params, x)
    out = jax.tree_util.tree_map(jax.block_until_ready, out)

    ref = backbone_base_forward_ref(params, x, return_interm_layers=True)
    for kname in sorted(out.keys()):
        a, b = out[kname], ref[kname]
        assert a.shape == b.shape, (kname, a.shape, b.shape)
        err = float(jnp.max(jnp.abs(a - b)))
        ref_mag = float(jnp.max(jnp.abs(b)))
        # bf16 inputs with f32 accumulation; tolerance covers re-rounding.
        assert err <= 1e-2 * (1.0 + ref_mag), (kname, err, ref_mag)

    print("KERNEL_OK")
</pallas_src>

<mosaic_0001>
module attributes {stable_mosaic.version = 11 : i64} {
  func.func @_conv3x3_kernel(%arg0: i32, %arg1: memref<1x4x8x74xbf16, #tpu.memory_space<vmem>>, %arg2: memref<9x8x8xbf16, #tpu.memory_space<vmem>>, %arg3: memref<8x1xf32, #tpu.memory_space<vmem>>, %arg4: memref<8x1xf32, #tpu.memory_space<vmem>>, %arg5: memref<2x1x64xf32, #tpu.memory_space<vmem>>, %arg6: memref<1x8x64xf32, #tpu.memory_space<vmem>>) attributes {dimension_semantics = [#tpu.dimension_semantics<parallel>], iteration_bounds = array<i64: 2>, scalar_prefetch = 0 : i64, scratch_operands = 0 : i64, tpu.core_type = #tpu.core_type<tc>, window_params = [{transform_indices = @transform_0, window_bounds = array<i64: 1, 4, 8, 74>}, {pipeline_mode = #tpu.pipeline_mode<synchronous>, transform_indices = @transform_1, window_bounds = array<i64: 9, 8, 8>}, {pipeline_mode = #tpu.pipeline_mode<synchronous>, transform_indices = @transform_2, window_bounds = array<i64: 8, 1>}, {pipeline_mode = #tpu.pipeline_mode<synchronous>, transform_indices = @transform_3, window_bounds = array<i64: 8, 1>}, {pipeline_mode = #tpu.pipeline_mode<synchronous>, transform_indices = @transform_4, window_bounds = array<i64: 2, 1, 64>}, {transform_indices = @transform_5, window_bounds = array<i64: 1, 8, 64>}]} {
    %c0 = arith.constant 0 : index
    %c0_0 = arith.constant 0 : index
    %c0_1 = arith.constant 0 : index
    %0 = vector.load %arg5[%c0, %c0_0, %c0_1] : memref<2x1x64xf32, #tpu.memory_space<vmem>>, vector<1x1x64xf32>
    %1 = vector.shape_cast %0 : vector<1x1x64xf32> to vector<1x64xf32>
    %cst = arith.constant 0.000000e+00 : f32
    %2 = vector.broadcast %cst : f32 to vector<8x64xf32>
    %c0_2 = arith.constant 0 : index
    %c1 = arith.constant 1 : index
    %c0_3 = arith.constant 0 : index
    %c0_4 = arith.constant 0 : index
    %3 = vector.load %arg1[%c0_2, %c1, %c0_3, %c0_4] : memref<1x4x8x74xbf16, #tpu.memory_space<vmem>>, vector<1x1x8x64xbf16>
    %4 = vector.shape_cast %3 : vector<1x1x8x64xbf16> to vector<8x64xbf16>
    %c0_5 = arith.constant 0 : index
    %c0_6 = arith.constant 0 : index
    %c0_7 = arith.constant 0 : index
    %5 = vector.load %arg2[%c0_5, %c0_6, %c0_7] : memref<9x8x8xbf16, #tpu.memory_space<vmem>>, vector<1x8x8xbf16>
    %6 = vector.shape_cast %5 : vector<1x8x8xbf16> to vector<8x8xbf16>
    %cst_8 = arith.constant dense<0.000000e+00> : vector<8x64xf32>
    %7 = tpu.matmul %6, %4, %cst_8 {dimension_numbers = #tpu.dot_dimension_numbers<[1], [0], [0], [1], [0, 0, 1, 1], [], []>} : vector<8x8xbf16>, vector<8x64xbf16>, vector<8x64xf32> -> vector<8x64xf32>
    %8 = vector.broadcast %1 : vector<1x64xf32> to vector<8x64xf32>
    %9 = arith.mulf %7, %8 : vector<8x64xf32>
    %10 = arith.addf %2, %9 : vector<8x64xf32>
    %c0_9 = arith.constant 0 : index
    %c0_10 = arith.constant 0 : index
    %c0_11 = arith.constant 0 : index
    %c1_12 = arith.constant 1 : index
    %11 = vector.load %arg1[%c0_9, %c0_10, %c0_11, %c1_12] : memref<1x4x8x74xbf16, #tpu.memory_space<vmem>>, vector<1x1x8x64xbf16>
    %12 = vector.shape_cast %11 : vector<1x1x8x64xbf16> to vector<8x64xbf16>
    %c1_13 = arith.constant 1 : index
    %c0_14 = arith.constant 0 : index
    %c0_15 = arith.constant 0 : index
    %13 = vector.load %arg2[%c1_13, %c0_14, %c0_15] : memref<9x8x8xbf16, #tpu.memory_space<vmem>>, vector<1x8x8xbf16>
    %14 = vector.shape_cast %13 : vector<1x8x8xbf16> to vector<8x8xbf16>
    %cst_16 = arith.constant dense<0.000000e+00> : vector<8x64xf32>
    %15 = tpu.matmul %14, %12, %cst_16 {dimension_numbers = #tpu.dot_dimension_numbers<[1], [0], [0], [1], [0, 0, 1, 1], [], []>} : vector<8x8xbf16>, vector<8x64xbf16>, vector<8x64xf32> -> vector<8x64xf32>
    %16 = arith.addf %10, %15 : vector<8x64xf32>
    %c0_17 = arith.constant 0 : index
    %c1_18 = arith.constant 1 : index
    %c0_19 = arith.constant 0 : index
    %c1_20 = arith.constant 1 : index
    %17 = vector.load %arg1[%c0_17, %c1_18, %c0_19, %c1_20] : memref<1x4x8x74xbf16, #tpu.memory_space<vmem>>, vector<1x1x8x64xbf16>
    %18 = vector.shape_cast %17 : vector<1x1x8x64xbf16> to vector<8x64xbf16>
    %c2 = arith.constant 2 : index
    %c0_21 = arith.constant 0 : index
    %c0_22 = arith.constant 0 : index
    %19 = vector.load %arg2[%c2, %c0_21, %c0_22] : memref<9x8x8xbf16, #tpu.memory_space<vmem>>, vector<1x8x8xbf16>
    %20 = vector.shape_cast %19 : vector<1x8x8xbf16> to vector<8x8xbf16>
    %cst_23 = arith.constant dense<0.000000e+00> : vector<8x64xf32>
    %21 = tpu.matmul %20, %18, %cst_23 {dimension_numbers = #tpu.dot_dimension_numbers<[1], [0], [0], [1], [0, 0, 1, 1], [], []>} : vector<8x8xbf16>, vector<8x64xbf16>, vector<8x64xf32> -> vector<8x64xf32>
    %22 = arith.addf %16, %21 : vector<8x64xf32>
    %c0_24 = arith.constant 0 : index
    %c3 = arith.constant 3 : index
    %c0_25 = arith.constant 0 : index
    %c0_26 = arith.constant 0 : index
    %23 = vector.load %arg1[%c0_24, %c3, %c0_25, %c0_26] : memref<1x4x8x74xbf16, #tpu.memory_space<vmem>>, vector<1x1x8x64xbf16>
    %24 = vector.shape_cast %23 : vector<1x1x8x64xbf16> to vector<8x64xbf16>
    %c3_27 = arith.constant 3 : index
    %c0_28 = arith.constant 0 : index
    %c0_29 = arith.constant 0 : index
    %25 = vector.load %arg2[%c3_27, %c0_28, %c0_29] : memref<9x8x8xbf16, #tpu.memory_space<vmem>>, vector<1x8x8xbf16>
    %26 = vector.shape_cast %25 : vector<1x8x8xbf16> to vector<8x8xbf16>
    %cst_30 = arith.constant dense<0.000000e+00> : vector<8x64xf32>
    %27 = tpu.matmul %26, %24, %cst_30 {dimension_numbers = #tpu.dot_dimension_numbers<[1], [0], [0], [1], [0, 0, 1, 1], [], []>} : vector<8x8xbf16>, vector<8x64xbf16>, vector<8x64xf32> -> vector<8x64xf32>
    %28 = vector.broadcast %1 : vector<1x64xf32> to vector<8x64xf32>
    %29 = arith.mulf %27, %28 : vector<8x64xf32>
    %30 = arith.addf %22, %29 : vector<8x64xf32>
    %c0_31 = arith.constant 0 : index
    %c2_32 = arith.constant 2 : index
    %c0_33 = arith.constant 0 : index
    %c1_34 = arith.constant 1 : index
    %31 = vector.load %arg1[%c0_31, %c2_32, %c0_33, %c1_34] : memref<1x4x8x74xbf16, #tpu.memory_space<vmem>>, vector<1x1x8x64xbf16>
    %32 = vector.shape_cast %31 : vector<1x1x8x64xbf16> to vector<8x64xbf16>
    %c4 = arith.constant 4 : index
    %c0_35 = arith.constant 0 : index
    %c0_36 = arith.constant 0 : index
    %33 = vector.load %arg2[%c4, %c0_35, %c0_36] : memref<9x8x8xbf16, #tpu.memory_space<vmem>>, vector<1x8x8xbf16>
    %34 = vector.shape_cast %33 : vector<1x8x8xbf16> to vector<8x8xbf16>
    %cst_37 = arith.constant dense<0.000000e+00> : vector<8x64xf32>
    %35 = tpu.matmul %34, %32, %cst_37 {dimension_numbers = #tpu.dot_dimension_numbers<[1], [0], [0], [1], [0, 0, 1, 1], [], []>} : vector<8x8xbf16>, vector<8x64xbf16>, vector<8x64xf32> -> vector<8x64xf32>
    %36 = arith.addf %30, %35 : vector<8x64xf32>
    %c0_38 = arith.constant 0 : index
    %c3_39 = arith.constant 3 : index
    %c0_40 = arith.constant 0 : index
    %c1_41 = arith.constant 1 : index
    %37 = vector.load %arg1[%c0_38, %c3_39, %c0_40, %c1_41] : memref<1x4x8x74xbf16, #tpu.memory_space<vmem>>, vector<1x1x8x64xbf16>
    %38 = vector.shape_cast %37 : vector<1x1x8x64xbf16> to vector<8x64xbf16>
    %c5 = arith.constant 5 : index
    %c0_42 = arith.constant 0 : index
    %c0_43 = arith.constant 0 : index
    %39 = vector.load %arg2[%c5, %c0_42, %c0_43] : memref<9x8x8xbf16, #tpu.memory_space<vmem>>, vector<1x8x8xbf16>
    %40 = vector.shape_cast %39 : vector<1x8x8xbf16> to vector<8x8xbf16>
    %cst_44 = arith.constant dense<0.000000e+00> : vector<8x64xf32>
    %41 = tpu.matmul %40, %38, %cst_44 {dimension_numbers = #tpu.dot_dimension_numbers<[1], [0], [0], [1], [0, 0, 1, 1], [], []>} : vector<8x8xbf16>, vector<8x64xbf16>, vector<8x64xf32> -> vector<8x64xf32>
    %42 = arith.addf %36, %41 : vector<8x64xf32>
    %c0_45 = arith.constant 0 : index
    %c1_46 = arith.constant 1 : index
    %c0_47 = arith.constant 0 : index
    %c8 = arith.constant 8 : index
    %43 = vector.load %arg1[%c0_45, %c1_46, %c0_47, %c8] : memref<1x4x8x74xbf16, #tpu.memory_space<vmem>>, vector<1x1x8x64xbf16>
    %44 = vector.shape_cast %43 : vector<1x1x8x64xbf16> to vector<8x64xbf16>
    %c6 = arith.constant 6 : index
    %c0_48 = arith.constant 0 : index
    %c0_49 = arith.constant 0 : index
    %45 = vector.load %arg2[%c6, %c0_48, %c0_49] : memref<9x8x8xbf16, #tpu.memory_space<vmem>>, vector<1x8x8xbf16>
    %46 = vector.shape_cast %45 : vector<1x8x8xbf16> to vector<8x8xbf16>
    %cst_50 = arith.constant dense<0.000000e+00> : vector<8x64xf32>
    %47 = tpu.matmul %46, %44, %cst_50 {dimension_numbers = #tpu.dot_dimension_numbers<[1], [0], [0], [1], [0, 0, 1, 1], [], []>} : vector<8x8xbf16>, vector<8x64xbf16>, vector<8x64xf32> -> vector<8x64xf32>
    %48 = vector.broadcast %1 : vector<1x64xf32> to vector<8x64xf32>
    %49 = arith.mulf %47, %48 : vector<8x64xf32>
    %50 = arith.addf %42, %49 : vector<8x64xf32>
    %c0_51 = arith.constant 0 : index
    %c0_52 = arith.constant 0 : index
    %c0_53 = arith.constant 0 : index
    %c9 = arith.constant 9 : index
    %51 = vector.load %arg1[%c0_51, %c0_52, %c0_53, %c9] : memref<1x4x8x74xbf16, #tpu.memory_space<vmem>>, vector<1x1x8x64xbf16>
    %52 = vector.shape_cast %51 : vector<1x1x8x64xbf16> to vector<8x64xbf16>
    %c7 = arith.constant 7 : index
    %c0_54 = arith.constant 0 : index
    %c0_55 = arith.constant 0 : index
    %53 = vector.load %arg2[%c7, %c0_54, %c0_55] : memref<9x8x8xbf16, #tpu.memory_space<vmem>>, vector<1x8x8xbf16>
    %54 = vector.shape_cast %53 : vector<1x8x8xbf16> to vector<8x8xbf16>
    %cst_56 = arith.constant dense<0.000000e+00> : vector<8x64xf32>
    %55 = tpu.matmul %54, %52, %cst_56 {dimension_numbers = #tpu.dot_dimension_numbers<[1], [0], [0], [1], [0, 0, 1, 1], [], []>} : vector<8x8xbf16>, vector<8x64xbf16>, vector<8x64xf32> -> vector<8x64xf32>
    %56 = arith.addf %50, %55 : vector<8x64xf32>
    %c0_57 = arith.constant 0 : index
    %c1_58 = arith.constant 1 : index
    %c0_59 = arith.constant 0 : index
    %c9_60 = arith.constant 9 : index
    %57 = vector.load %arg1[%c0_57, %c1_58, %c0_59, %c9_60] : memref<1x4x8x74xbf16, #tpu.memory_space<vmem>>, vector<1x1x8x64xbf16>
    %58 = vector.shape_cast %57 : vector<1x1x8x64xbf16> to vector<8x64xbf16>
    %c8_61 = arith.constant 8 : index
    %c0_62 = arith.constant 0 : index
    %c0_63 = arith.constant 0 : index
    %59 = vector.load %arg2[%c8_61, %c0_62, %c0_63] : memref<9x8x8xbf16, #tpu.memory_space<vmem>>, vector<1x8x8xbf16>
    %60 = vector.shape_cast %59 : vector<1x8x8xbf16> to vector<8x8xbf16>
    %cst_64 = arith.constant dense<0.000000e+00> : vector<8x64xf32>
    %61 = tpu.matmul %60, %58, %cst_64 {dimension_numbers = #tpu.dot_dimension_numbers<[1], [0], [0], [1], [0, 0, 1, 1], [], []>} : vector<8x8xbf16>, vector<8x64xbf16>, vector<8x64xf32> -> vector<8x64xf32>
    %62 = arith.addf %56, %61 : vector<8x64xf32>
    %c0_65 = arith.constant 0 : index
    %c0_66 = arith.constant 0 : index
    %63 = vector.load %arg3[%c0_65, %c0_66] : memref<8x1xf32, #tpu.memory_space<vmem>>, vector<8x1xf32>
    %64 = vector.broadcast %63 : vector<8x1xf32> to vector<8x64xf32>
    %65 = arith.mulf %62, %64 : vector<8x64xf32>
    %c0_67 = arith.constant 0 : index
    %c0_68 = arith.constant 0 : index
    %66 = vector.load %arg4[%c0_67, %c0_68] : memref<8x1xf32, #tpu.memory_space<vmem>>, vector<8x1xf32>
    %67 = vector.broadcast %66 : vector<8x1xf32> to vector<8x64xf32>
    %68 = arith.addf %65, %67 : vector<8x64xf32>
    %cst_69 = arith.constant 0.000000e+00 : f32
    %69 = vector.broadcast %cst_69 : f32 to vector<8x64xf32>
    %70 = arith.maximumf %68, %69 : vector<8x64xf32>
    %c0_70 = arith.constant 0 : index
    %c0_71 = arith.constant 0 : index
    %c0_72 = arith.constant 0 : index
    %71 = vector.load %arg6[%c0_70, %c0_71, %c0_72] : memref<1x8x64xf32, #tpu.memory_space<vmem>>, vector<1x8x64xf32>
    %72 = vector.shape_cast %71 : vector<1x8x64xf32> to vector<8x64xf32>
    %73 = vector.shape_cast %70 : vector<8x64xf32> to vector<1x8x64xf32>
    tpu.vector_store %arg6[%c0_70, %c0_71, %c0_72], %73 {strides = array<i32>} : memref<1x8x64xf32, #tpu.memory_space<vmem>>, vector<1x8x64xf32>,
    return
  }
  func.func @transform_0(%arg0: i32) -> (i32, i32, i32, i32) {
    %c0_i32 = arith.constant 0 : i32
    %c0_i32_0 = arith.constant 0 : i32
    %c0_i32_1 = arith.constant 0 : i32
    %c0_i32_2 = arith.constant 0 : i32
    return %arg0, %c0_i32, %c0_i32_0, %c0_i32_1 : i32, i32, i32, i32
  }
  func.func @transform_1(%arg0: i32) -> (i32, i32, i32) {
    %c0_i32 = arith.constant 0 : i32
    %c0_i32_0 = arith.constant 0 : i32
    %c0_i32_1 = arith.constant 0 : i32
    %c0_i32_2 = arith.constant 0 : i32
    return %c0_i32, %c0_i32_0, %c0_i32_1 : i32, i32, i32
  }
  func.func @transform_2(%arg0: i32) -> (i32, i32) {
    %c0_i32 = arith.constant 0 : i32
    %c0_i32_0 = arith.constant 0 : i32
    %c0_i32_1 = arith.constant 0 : i32
    return %c0_i32, %c0_i32_0 : i32, i32
  }
  func.func @transform_3(%arg0: i32) -> (i32, i32) {
    %c0_i32 = arith.constant 0 : i32
    %c0_i32_0 = arith.constant 0 : i32
    %c0_i32_1 = arith.constant 0 : i32
    return %c0_i32, %c0_i32_0 : i32, i32
  }
  func.func @transform_4(%arg0: i32) -> (i32, i32, i32) {
    %c0_i32 = arith.constant 0 : i32
    %c0_i32_0 = arith.constant 0 : i32
    %c0_i32_1 = arith.constant 0 : i32
    %c0_i32_2 = arith.constant 0 : i32
    return %c0_i32, %c0_i32_0, %c0_i32_1 : i32, i32, i32
  }
  func.func @transform_5(%arg0: i32) -> (i32, i32, i32) {
    %c0_i32 = arith.constant 0 : i32
    %c0_i32_0 = arith.constant 0 : i32
    %c0_i32_1 = arith.constant 0 : i32
    return %arg0, %c0_i32, %c0_i32_0 : i32, i32, i32
  }
}

module attributes {stable_mosaic.version = 11 : i64} {
  func.func @_conv3x3_kernel(%arg0: i32, %arg1: memref<1x1x8x82xbf16, #tpu.memory_space<vmem>>, %arg2: memref<9x8x8xbf16, #tpu.memory_space<vmem>>, %arg3: memref<8x1xf32, #tpu.memory_space<vmem>>, %arg4: memref<8x1xf32, #tpu.memory_space<vmem>>, %arg5: memref<2x1x64xf32, #tpu.memory_space<vmem>>, %arg6: memref<1x8x64xf32, #tpu.memory_space<vmem>>) attributes {dimension_semantics = [#tpu.dimension_semantics<parallel>], iteration_bounds = array<i64: 2>, scalar_prefetch = 0 : i64, scratch_operands = 0 : i64, tpu.core_type = #tpu.core_type<tc>, window_params = [{transform_indices = @transform_0, window_bounds = array<i64: 1, 1, 8, 82>}, {pipeline_mode = #tpu.pipeline_mode<synchronous>, transform_indices = @transform_1, window_bounds = array<i64: 9, 8, 8>}, {pipeline_mode = #tpu.pipeline_mode<synchronous>, transform_indices = @transform_2, window_bounds = array<i64: 8, 1>}, {pipeline_mode = #tpu.pipeline_mode<synchronous>, transform_indices = @transform_3, window_bounds = array<i64: 8, 1>}, {pipeline_mode = #tpu.pipeline_mode<synchronous>, transform_indices = @transform_4, window_bounds = array<i64: 2, 1, 64>}, {transform_indices = @transform_5, window_bounds = array<i64: 1, 8, 64>}]} {
    %c0 = arith.constant 0 : index
    %c0_0 = arith.constant 0 : index
    %c0_1 = arith.constant 0 : index
    %0 = vector.load %arg5[%c0, %c0_0, %c0_1] : memref<2x1x64xf32, #tpu.memory_space<vmem>>, vector<1x1x64xf32>
    %1 = vector.shape_cast %0 : vector<1x1x64xf32> to vector<1x64xf32>
    %c1 = arith.constant 1 : index
    %c0_2 = arith.constant 0 : index
    %c0_3 = arith.constant 0 : index
    %2 = vector.load %arg5[%c1, %c0_2, %c0_3] : memref<2x1x64xf32, #tpu.memory_space<vmem>>, vector<1x1x64xf32>
    %3 = vector.shape_cast %2 : vector<1x1x64xf32> to vector<1x64xf32>
    %cst = arith.constant 0.000000e+00 : f32
    %4 = vector.broadcast %cst : f32 to vector<8x64xf32>
    %c0_4 = arith.constant 0 : index
    %c0_5 = arith.constant 0 : index
    %c0_6 = arith.constant 0 : index
    %c0_7 = arith.constant 0 : index
    %5 = vector.load %arg1[%c0_4, %c0_5, %c0_6, %c0_7] : memref<1x1x8x82xbf16, #tpu.memory_space<vmem>>, vector<1x1x8x64xbf16>
    %6 = vector.shape_cast %5 : vector<1x1x8x64xbf16> to vector<8x64xbf16>
    %c0_8 = arith.constant 0 : index
    %c0_9 = arith.constant 0 : index
    %c0_10 = arith.constant 0 : index
    %7 = vector.load %arg2[%c0_8, %c0_9, %c0_10] : memref<9x8x8xbf16, #tpu.memory_space<vmem>>, vector<1x8x8xbf16>
    %8 = vector.shape_cast %7 : vector<1x8x8xbf16> to vector<8x8xbf16>
    %cst_11 = arith.constant dense<0.000000e+00> : vector<8x64xf32>
    %9 = tpu.matmul %8, %6, %cst_11 {dimension_numbers = #tpu.dot_dimension_numbers<[1], [0], [0], [1], [0, 0, 1, 1], [], []>} : vector<8x8xbf16>, vector<8x64xbf16>, vector<8x64xf32> -> vector<8x64xf32>
    %10 = vector.broadcast %1 : vector<1x64xf32> to vector<8x64xf32>
    %11 = arith.mulf %9, %10 : vector<8x64xf32>
    %12 = arith.addf %4, %11 : vector<8x64xf32>
    %c0_12 = arith.constant 0 : index
    %c0_13 = arith.constant 0 : index
    %c0_14 = arith.constant 0 : index
    %c1_15 = arith.constant 1 : index
    %13 = vector.load %arg1[%c0_12, %c0_13, %c0_14, %c1_15] : memref<1x1x8x82xbf16, #tpu.memory_space<vmem>>, vector<1x1x8x64xbf16>
    %14 = vector.shape_cast %13 : vector<1x1x8x64xbf16> to vector<8x64xbf16>
    %c1_16 = arith.constant 1 : index
    %c0_17 = arith.constant 0 : index
    %c0_18 = arith.constant 0 : index
    %15 = vector.load %arg2[%c1_16, %c0_17, %c0_18] : memref<9x8x8xbf16, #tpu.memory_space<vmem>>, vector<1x8x8xbf16>
    %16 = vector.shape_cast %15 : vector<1x8x8xbf16> to vector<8x8xbf16>
    %cst_19 = arith.constant dense<0.000000e+00> : vector<8x64xf32>
    %17 = tpu.matmul %16, %14, %cst_19 {dimension_numbers = #tpu.dot_dimension_numbers<[1], [0], [0], [1], [0, 0, 1, 1], [], []>} : vector<8x8xbf16>, vector<8x64xbf16>, vector<8x64xf32> -> vector<8x64xf32>
    %18 = arith.addf %12, %17 : vector<8x64xf32>
    %c0_20 = arith.constant 0 : index
    %c0_21 = arith.constant 0 : index
    %c0_22 = arith.constant 0 : index
    %c2 = arith.constant 2 : index
    %19 = vector.load %arg1[%c0_20, %c0_21, %c0_22, %c2] : memref<1x1x8x82xbf16, #tpu.memory_space<vmem>>, vector<1x1x8x64xbf16>
    %20 = vector.shape_cast %19 : vector<1x1x8x64xbf16> to vector<8x64xbf16>
    %c2_23 = arith.constant 2 : index
    %c0_24 = arith.constant 0 : index
    %c0_25 = arith.constant 0 : index
    %21 = vector.load %arg2[%c2_23, %c0_24, %c0_25] : memref<9x8x8xbf16, #tpu.memory_space<vmem>>, vector<1x8x8xbf16>
    %22 = vector.shape_cast %21 : vector<1x8x8xbf16> to vector<8x8xbf16>
    %cst_26 = arith.constant dense<0.000000e+00> : vector<8x64xf32>
    %23 = tpu.matmul %22, %20, %cst_26 {dimension_numbers = #tpu.dot_dimension_numbers<[1], [0], [0], [1], [0, 0, 1, 1], [], []>} : vector<8x8xbf16>, vector<8x64xbf16>, vector<8x64xf32> -> vector<8x64xf32>
    %24 = vector.broadcast %3 : vector<1x64xf32> to vector<8x64xf32>
    %25 = arith.mulf %23, %24 : vector<8x64xf32>
    %26 = arith.addf %18, %25 : vector<8x64xf32>
    %c0_27 = arith.constant 0 : index
    %c0_28 = arith.constant 0 : index
    %c0_29 = arith.constant 0 : index
    %c8 = arith.constant 8 : index
    %27 = vector.load %arg1[%c0_27, %c0_28, %c0_29, %c8] : memref<1x1x8x82xbf16, #tpu.memory_space<vmem>>, vector<1x1x8x64xbf16>
    %28 = vector.shape_cast %27 : vector<1x1x8x64xbf16> to vector<8x64xbf16>
    %c3 = arith.constant 3 : index
    %c0_30 = arith.constant 0 : index
    %c0_31 = arith.constant 0 : index
    %29 = vector.load %arg2[%c3, %c0_30, %c0_31] : memref<9x8x8xbf16, #tpu.memory_space<vmem>>, vector<1x8x8xbf16>
    %30 = vector.shape_cast %29 : vector<1x8x8xbf16> to vector<8x8xbf16>
    %cst_32 = arith.constant dense<0.000000e+00> : vector<8x64xf32>
    %31 = tpu.matmul %30, %28, %cst_32 {dimension_numbers = #tpu.dot_dimension_numbers<[1], [0], [0], [1], [0, 0, 1, 1], [], []>} : vector<8x8xbf16>, vector<8x64xbf16>, vector<8x64xf32> -> vector<8x64xf32>
    %32 = vector.broadcast %1 : vector<1x64xf32> to vector<8x64xf32>
    %33 = arith.mulf %31, %32 : vector<8x64xf32>
    %34 = arith.addf %26, %33 : vector<8x64xf32>
    %c0_33 = arith.constant 0 : index
    %c0_34 = arith.constant 0 : index
    %c0_35 = arith.constant 0 : index
    %c9 = arith.constant 9 : index
    %35 = vector.load %arg1[%c0_33, %c0_34, %c0_35, %c9] : memref<1x1x8x82xbf16, #tpu.memory_space<vmem>>, vector<1x1x8x64xbf16>
    %36 = vector.shape_cast %35 : vector<1x1x8x64xbf16> to vector<8x64xbf16>
    %c4 = arith.constant 4 : index
    %c0_36 = arith.constant 0 : index
    %c0_37 = arith.constant 0 : index
    %37 = vector.load %arg2[%c4, %c0_36, %c0_37] : memref<9x8x8xbf16, #tpu.memory_space<vmem>>, vector<1x8x8xbf16>
    %38 = vector.shape_cast %37 : vector<1x8x8xbf16> to vector<8x8xbf16>
    %cst_38 = arith.constant dense<0.000000e+00> : vector<8x64xf32>
    %39 = tpu.matmul %38, %36, %cst_38 {dimension_numbers = #tpu.dot_dimension_numbers<[1], [0], [0], [1], [0, 0, 1, 1], [], []>} : vector<8x8xbf16>, vector<8x64xbf16>, vector<8x64xf32> -> vector<8x64xf32>
    %40 = arith.addf %34, %39 : vector<8x64xf32>
    %c0_39 = arith.constant 0 : index
    %c0_40 = arith.constant 0 : index
    %c0_41 = arith.constant 0 : index
    %c10 = arith.constant 10 : index
    %41 = vector.load %arg1[%c0_39, %c0_40, %c0_41, %c10] : memref<1x1x8x82xbf16, #tpu.memory_space<vmem>>, vector<1x1x8x64xbf16>
    %42 = vector.shape_cast %41 : vector<1x1x8x64xbf16> to vector<8x64xbf16>
    %c5 = arith.constant 5 : index
    %c0_42 = arith.constant 0 : index
    %c0_43 = arith.constant 0 : index
    %43 = vector.load %arg2[%c5, %c0_42, %c0_43] : memref<9x8x8xbf16, #tpu.memory_space<vmem>>, vector<1x8x8xbf16>
    %44 = vector.shape_cast %43 : vector<1x8x8xbf16> to vector<8x8xbf16>
    %cst_44 = arith.constant dense<0.000000e+00> : vector<8x64xf32>
    %45 = tpu.matmul %44, %42, %cst_44 {dimension_numbers = #tpu.dot_dimension_numbers<[1], [0], [0], [1], [0, 0, 1, 1], [], []>} : vector<8x8xbf16>, vector<8x64xbf16>, vector<8x64xf32> -> vector<8x64xf32>
    %46 = vector.broadcast %3 : vector<1x64xf32> to vector<8x64xf32>
    %47 = arith.mulf %45, %46 : vector<8x64xf32>
    %48 = arith.addf %40, %47 : vector<8x64xf32>
    %c0_45 = arith.constant 0 : index
    %c0_46 = arith.constant 0 : index
    %c0_47 = arith.constant 0 : index
    %c16 = arith.constant 16 : index
    %49 = vector.load %arg1[%c0_45, %c0_46, %c0_47, %c16] : memref<1x1x8x82xbf16, #tpu.memory_space<vmem>>, vector<1x1x8x64xbf16>
    %50 = vector.shape_cast %49 : vector<1x1x8x64xbf16> to vector<8x64xbf16>
    %c6 = arith.constant 6 : index
    %c0_48 = arith.constant 0 : index
    %c0_49 = arith.constant 0 : index
    %51 = vector.load %arg2[%c6, %c0_48, %c0_49] : memref<9x8x8xbf16, #tpu.memory_space<vmem>>, vector<1x8x8xbf16>
    %52 = vector.shape_cast %51 : vector<1x8x8xbf16> to vector<8x8xbf16>
    %cst_50 = arith.constant dense<0.000000e+00> : vector<8x64xf32>
    %53 = tpu.matmul %52, %50, %cst_50 {dimension_numbers = #tpu.dot_dimension_numbers<[1], [0], [0], [1], [0, 0, 1, 1], [], []>} : vector<8x8xbf16>, vector<8x64xbf16>, vector<8x64xf32> -> vector<8x64xf32>
    %54 = vector.broadcast %1 : vector<1x64xf32> to vector<8x64xf32>
    %55 = arith.mulf %53, %54 : vector<8x64xf32>
    %56 = arith.addf %48, %55 : vector<8x64xf32>
    %c0_51 = arith.constant 0 : index
    %c0_52 = arith.constant 0 : index
    %c0_53 = arith.constant 0 : index
    %c17 = arith.constant 17 : index
    %57 = vector.load %arg1[%c0_51, %c0_52, %c0_53, %c17] : memref<1x1x8x82xbf16, #tpu.memory_space<vmem>>, vector<1x1x8x64xbf16>
    %58 = vector.shape_cast %57 : vector<1x1x8x64xbf16> to vector<8x64xbf16>
    %c7 = arith.constant 7 : index
    %c0_54 = arith.constant 0 : index
    %c0_55 = arith.constant 0 : index
    %59 = vector.load %arg2[%c7, %c0_54, %c0_55] : memref<9x8x8xbf16, #tpu.memory_space<vmem>>, vector<1x8x8xbf16>
    %60 = vector.shape_cast %59 : vector<1x8x8xbf16> to vector<8x8xbf16>
    %cst_56 = arith.constant dense<0.000000e+00> : vector<8x64xf32>
    %61 = tpu.matmul %60, %58, %cst_56 {dimension_numbers = #tpu.dot_dimension_numbers<[1], [0], [0], [1], [0, 0, 1, 1], [], []>} : vector<8x8xbf16>, vector<8x64xbf16>, vector<8x64xf32> -> vector<8x64xf32>
    %62 = arith.addf %56, %61 : vector<8x64xf32>
    %c0_57 = arith.constant 0 : index
    %c0_58 = arith.constant 0 : index
    %c0_59 = arith.constant 0 : index
    %c18 = arith.constant 18 : index
    %63 = vector.load %arg1[%c0_57, %c0_58, %c0_59, %c18] : memref<1x1x8x82xbf16, #tpu.memory_space<vmem>>, vector<1x1x8x64xbf16>
    %64 = vector.shape_cast %63 : vector<1x1x8x64xbf16> to vector<8x64xbf16>
    %c8_60 = arith.constant 8 : index
    %c0_61 = arith.constant 0 : index
    %c0_62 = arith.constant 0 : index
    %65 = vector.load %arg2[%c8_60, %c0_61, %c0_62] : memref<9x8x8xbf16, #tpu.memory_space<vmem>>, vector<1x8x8xbf16>
    %66 = vector.shape_cast %65 : vector<1x8x8xbf16> to vector<8x8xbf16>
    %cst_63 = arith.constant dense<0.000000e+00> : vector<8x64xf32>
    %67 = tpu.matmul %66, %64, %cst_63 {dimension_numbers = #tpu.dot_dimension_numbers<[1], [0], [0], [1], [0, 0, 1, 1], [], []>} : vector<8x8xbf16>, vector<8x64xbf16>, vector<8x64xf32> -> vector<8x64xf32>
    %68 = vector.broadcast %3 : vector<1x64xf32> to vector<8x64xf32>
    %69 = arith.mulf %67, %68 : vector<8x64xf32>
    %70 = arith.addf %62, %69 : vector<8x64xf32>
    %c0_64 = arith.constant 0 : index
    %c0_65 = arith.constant 0 : index
    %71 = vector.load %arg3[%c0_64, %c0_65] : memref<8x1xf32, #tpu.memory_space<vmem>>, vector<8x1xf32>
    %72 = vector.broadcast %71 : vector<8x1xf32> to vector<8x64xf32>
    %73 = arith.mulf %70, %72 : vector<8x64xf32>
    %c0_66 = arith.constant 0 : index
    %c0_67 = arith.constant 0 : index
    %74 = vector.load %arg4[%c0_66, %c0_67] : memref<8x1xf32, #tpu.memory_space<vmem>>, vector<8x1xf32>
    %75 = vector.broadcast %74 : vector<8x1xf32> to vector<8x64xf32>
    %76 = arith.addf %73, %75 : vector<8x64xf32>
    %cst_68 = arith.constant 0.000000e+00 : f32
    %77 = vector.broadcast %cst_68 : f32 to vector<8x64xf32>
    %78 = arith.maximumf %76, %77 : vector<8x64xf32>
    %c0_69 = arith.constant 0 : index
    %c0_70 = arith.constant 0 : index
    %c0_71 = arith.constant 0 : index
    %79 = vector.load %arg6[%c0_69, %c0_70, %c0_71] : memref<1x8x64xf32, #tpu.memory_space<vmem>>, vector<1x8x64xf32>
    %80 = vector.shape_cast %79 : vector<1x8x64xf32> to vector<8x64xf32>
    %81 = vector.shape_cast %78 : vector<8x64xf32> to vector<1x8x64xf32>
    tpu.vector_store %arg6[%c0_69, %c0_70, %c0_71], %81 {strides = array<i32>} : memref<1x8x64xf32, #tpu.memory_space<vmem>>, vector<1x8x64xf32>,
    return
  }
  func.func @transform_0(%arg0: i32) -> (i32, i32, i32, i32) {
    %c0_i32 = arith.constant 0 : i32
    %c0_i32_0 = arith.constant 0 : i32
    %c0_i32_1 = arith.constant 0 : i32
    %c0_i32_2 = arith.constant 0 : i32
    return %arg0, %c0_i32, %c0_i32_0, %c0_i32_1 : i32, i32, i32, i32
  }
  func.func @transform_1(%arg0: i32) -> (i32, i32, i32) {
    %c0_i32 = arith.constant 0 : i32
    %c0_i32_0 = arith.constant 0 : i32
    %c0_i32_1 = arith.constant 0 : i32
    %c0_i32_2 = arith.constant 0 : i32
    return %c0_i32, %c0_i32_0, %c0_i32_1 : i32, i32, i32
  }
  func.func @transform_2(%arg0: i32) -> (i32, i32) {
    %c0_i32 = arith.constant 0 : i32
    %c0_i32_0 = arith.constant 0 : i32
    %c0_i32_1 = arith.constant 0 : i32
    return %c0_i32, %c0_i32_0 : i32, i32
  }
  func.func @transform_3(%arg0: i32) -> (i32, i32) {
    %c0_i32 = arith.constant 0 : i32
    %c0_i32_0 = arith.constant 0 : i32
    %c0_i32_1 = arith.constant 0 : i32
    return %c0_i32, %c0_i32_0 : i32, i32
  }
  func.func @transform_4(%arg0: i32) -> (i32, i32, i32) {
    %c0_i32 = arith.constant 0 : i32
    %c0_i32_0 = arith.constant 0 : i32
    %c0_i32_1 = arith.constant 0 : i32
    %c0_i32_2 = arith.constant 0 : i32
    return %c0_i32, %c0_i32_0, %c0_i32_1 : i32, i32, i32
  }
  func.func @transform_5(%arg0: i32) -> (i32, i32, i32) {
    %c0_i32 = arith.constant 0 : i32
    %c0_i32_0 = arith.constant 0 : i32
    %c0_i32_1 = arith.constant 0 : i32
    return %arg0, %c0_i32, %c0_i32_0 : i32, i32, i32
  }
}

module attributes {stable_mosaic.version = 11 : i64} {
  func.func @_conv3x3_kernel(%arg0: i32, %arg1: memref<1x4x8x22xbf16, #tpu.memory_space<vmem>>, %arg2: memref<9x16x8xbf16, #tpu.memory_space<vmem>>, %arg3: memref<16x1xf32, #tpu.memory_space<vmem>>, %arg4: memref<16x1xf32, #tpu.memory_space<vmem>>, %arg5: memref<2x1x16xf32, #tpu.memory_space<vmem>>, %arg6: memref<1x16x16xf32, #tpu.memory_space<vmem>>) attributes {dimension_semantics = [#tpu.dimension_semantics<parallel>], iteration_bounds = array<i64: 2>, scalar_prefetch = 0 : i64, scratch_operands = 0 : i64, tpu.core_type = #tpu.core_type<tc>, window_params = [{transform_indices = @transform_0, window_bounds = array<i64: 1, 4, 8, 22>}, {pipeline_mode = #tpu.pipeline_mode<synchronous>, transform_indices = @transform_1, window_bounds = array<i64: 9, 16, 8>}, {pipeline_mode = #tpu.pipeline_mode<synchronous>, transform_indices = @transform_2, window_bounds = array<i64: 16, 1>}, {pipeline_mode = #tpu.pipeline_mode<synchronous>, transform_indices = @transform_3, window_bounds = array<i64: 16, 1>}, {pipeline_mode = #tpu.pipeline_mode<synchronous>, transform_indices = @transform_4, window_bounds = array<i64: 2, 1, 16>}, {transform_indices = @transform_5, window_bounds = array<i64: 1, 16, 16>}]} {
    %c0 = arith.constant 0 : index
    %c0_0 = arith.constant 0 : index
    %c0_1 = arith.constant 0 : index
    %0 = vector.load %arg5[%c0, %c0_0, %c0_1] : memref<2x1x16xf32, #tpu.memory_space<vmem>>, vector<1x1x16xf32>
    %1 = vector.shape_cast %0 : vector<1x1x16xf32> to vector<1x16xf32>
    %cst = arith.constant 0.000000e+00 : f32
    %2 = vector.broadcast %cst : f32 to vector<16x16xf32>
    %c0_2 = arith.constant 0 : index
    %c1 = arith.constant 1 : index
    %c0_3 = arith.constant 0 : index
    %c0_4 = arith.constant 0 : index
    %3 = vector.load %arg1[%c0_2, %c1, %c0_3, %c0_4] : memref<1x4x8x22xbf16, #tpu.memory_space<vmem>>, vector<1x1x8x16xbf16>
    %4 = vector.shape_cast %3 : vector<1x1x8x16xbf16> to vector<8x16xbf16>
    %c0_5 = arith.constant 0 : index
    %c0_6 = arith.constant 0 : index
    %c0_7 = arith.constant 0 : index
    %5 = vector.load %arg2[%c0_5, %c0_6, %c0_7] : memref<9x16x8xbf16, #tpu.memory_space<vmem>>, vector<1x16x8xbf16>
    %6 = vector.shape_cast %5 : vector<1x16x8xbf16> to vector<16x8xbf16>
    %cst_8 = arith.constant dense<0.000000e+00> : vector<16x16xf32>
    %7 = tpu.matmul %6, %4, %cst_8 {dimension_numbers = #tpu.dot_dimension_numbers<[1], [0], [0], [1], [0, 0, 1, 1], [], []>} : vector<16x8xbf16>, vector<8x16xbf16>, vector<16x16xf32> -> vector<16x16xf32>
    %8 = vector.broadcast %1 : vector<1x16xf32> to vector<16x16xf32>
    %9 = arith.mulf %7, %8 : vector<16x16xf32>
    %10 = arith.addf %2, %9 : vector<16x16xf32>
    %c0_9 = arith.constant 0 : index
    %c0_10 = arith.constant 0 : index
    %c0_11 = arith.constant 0 : index
    %c1_12 = arith.constant 1 : index
    %11 = vector.load %arg1[%c0_9, %c0_10, %c0_11, %c1_12] : memref<1x4x8x22xbf16, #tpu.memory_space<vmem>>, vector<1x1x8x16xbf16>
    %12 = vector.shape_cast %11 : vector<1x1x8x16xbf16> to vector<8x16xbf16>
    %c1_13 = arith.constant 1 : index
    %c0_14 = arith.constant 0 : index
    %c0_15 = arith.constant 0 : index
    %13 = vector.load %arg2[%c1_13, %c0_14, %c0_15] : memref<9x16x8xbf16, #tpu.memory_space<vmem>>, vector<1x16x8xbf16>
    %14 = vector.shape_cast %13 : vector<1x16x8xbf16> to vector<16x8xbf16>
    %cst_16 = arith.constant dense<0.000000e+00> : vector<16x16xf32>
    %15 = tpu.matmul %14, %12, %cst_16 {dimension_numbers = #tpu.dot_dimension_numbers<[1], [0], [0], [1], [0, 0, 1, 1], [], []>} : vector<16x8xbf16>, vector<8x16xbf16>, vector<16x16xf32> -> vector<16x16xf32>
    %16 = arith.addf %10, %15 : vector<16x16xf32>
    %c0_17 = arith.constant 0 : index
    %c1_18 = arith.constant 1 : index
    %c0_19 = arith.constant 0 : index
    %c1_20 = arith.constant 1 : index
    %17 = vector.load %arg1[%c0_17, %c1_18, %c0_19, %c1_20] : memref<1x4x8x22xbf16, #tpu.memory_space<vmem>>, vector<1x1x8x16xbf16>
    %18 = vector.shape_cast %17 : vector<1x1x8x16xbf16> to vector<8x16xbf16>
    %c2 = arith.constant 2 : index
    %c0_21 = arith.constant 0 : index
    %c0_22 = arith.constant 0 : index
    %19 = vector.load %arg2[%c2, %c0_21, %c0_22] : memref<9x16x8xbf16, #tpu.memory_space<vmem>>, vector<1x16x8xbf16>
    %20 = vector.shape_cast %19 : vector<1x16x8xbf16> to vector<16x8xbf16>
    %cst_23 = arith.constant dense<0.000000e+00> : vector<16x16xf32>
    %21 = tpu.matmul %20, %18, %cst_23 {dimension_numbers = #tpu.dot_dimension_numbers<[1], [0], [0], [1], [0, 0, 1, 1], [], []>} : vector<16x8xbf16>, vector<8x16xbf16>, vector<16x16xf32> -> vector<16x16xf32>
    %22 = arith.addf %16, %21 : vector<16x16xf32>
    %c0_24 = arith.constant 0 : index
    %c3 = arith.constant 3 : index
    %c0_25 = arith.constant 0 : index
    %c0_26 = arith.constant 0 : index
    %23 = vector.load %arg1[%c0_24, %c3, %c0_25, %c0_26] : memref<1x4x8x22xbf16, #tpu.memory_space<vmem>>, vector<1x1x8x16xbf16>
    %24 = vector.shape_cast %23 : vector<1x1x8x16xbf16> to vector<8x16xbf16>
    %c3_27 = arith.constant 3 : index
    %c0_28 = arith.constant 0 : index
    %c0_29 = arith.constant 0 : index
    %25 = vector.load %arg2[%c3_27, %c0_28, %c0_29] : memref<9x16x8xbf16, #tpu.memory_space<vmem>>, vector<1x16x8xbf16>
    %26 = vector.shape_cast %25 : vector<1x16x8xbf16> to vector<16x8xbf16>
    %cst_30 = arith.constant dense<0.000000e+00> : vector<16x16xf32>
    %27 = tpu.matmul %26, %24, %cst_30 {dimension_numbers = #tpu.dot_dimension_numbers<[1], [0], [0], [1], [0, 0, 1, 1], [], []>} : vector<16x8xbf16>, vector<8x16xbf16>, vector<16x16xf32> -> vector<16x16xf32>
    %28 = vector.broadcast %1 : vector<1x16xf32> to vector<16x16xf32>
    %29 = arith.mulf %27, %28 : vector<16x16xf32>
    %30 = arith.addf %22, %29 : vector<16x16xf32>
    %c0_31 = arith.constant 0 : index
    %c2_32 = arith.constant 2 : index
    %c0_33 = arith.constant 0 : index
    %c1_34 = arith.constant 1 : index
    %31 = vector.load %arg1[%c0_31, %c2_32, %c0_33, %c1_34] : memref<1x4x8x22xbf16, #tpu.memory_space<vmem>>, vector<1x1x8x16xbf16>
    %32 = vector.shape_cast %31 : vector<1x1x8x16xbf16> to vector<8x16xbf16>
    %c4 = arith.constant 4 : index
    %c0_35 = arith.constant 0 : index
    %c0_36 = arith.constant 0 : index
    %33 = vector.load %arg2[%c4, %c0_35, %c0_36] : memref<9x16x8xbf16, #tpu.memory_space<vmem>>, vector<1x16x8xbf16>
    %34 = vector.shape_cast %33 : vector<1x16x8xbf16> to vector<16x8xbf16>
    %cst_37 = arith.constant dense<0.000000e+00> : vector<16x16xf32>
    %35 = tpu.matmul %34, %32, %cst_37 {dimension_numbers = #tpu.dot_dimension_numbers<[1], [0], [0], [1], [0, 0, 1, 1], [], []>} : vector<16x8xbf16>, vector<8x16xbf16>, vector<16x16xf32> -> vector<16x16xf32>
    %36 = arith.addf %30, %35 : vector<16x16xf32>
    %c0_38 = arith.constant 0 : index
    %c3_39 = arith.constant 3 : index
    %c0_40 = arith.constant 0 : index
    %c1_41 = arith.constant 1 : index
    %37 = vector.load %arg1[%c0_38, %c3_39, %c0_40, %c1_41] : memref<1x4x8x22xbf16, #tpu.memory_space<vmem>>, vector<1x1x8x16xbf16>
    %38 = vector.shape_cast %37 : vector<1x1x8x16xbf16> to vector<8x16xbf16>
    %c5 = arith.constant 5 : index
    %c0_42 = arith.constant 0 : index
    %c0_43 = arith.constant 0 : index
    %39 = vector.load %arg2[%c5, %c0_42, %c0_43] : memref<9x16x8xbf16, #tpu.memory_space<vmem>>, vector<1x16x8xbf16>
    %40 = vector.shape_cast %39 : vector<1x16x8xbf16> to vector<16x8xbf16>
    %cst_44 = arith.constant dense<0.000000e+00> : vector<16x16xf32>
    %41 = tpu.matmul %40, %38, %cst_44 {dimension_numbers = #tpu.dot_dimension_numbers<[1], [0], [0], [1], [0, 0, 1, 1], [], []>} : vector<16x8xbf16>, vector<8x16xbf16>, vector<16x16xf32> -> vector<16x16xf32>
    %42 = arith.addf %36, %41 : vector<16x16xf32>
    %c0_45 = arith.constant 0 : index
    %c1_46 = arith.constant 1 : index
    %c0_47 = arith.constant 0 : index
    %c4_48 = arith.constant 4 : index
    %43 = vector.load %arg1[%c0_45, %c1_46, %c0_47, %c4_48] : memref<1x4x8x22xbf16, #tpu.memory_space<vmem>>, vector<1x1x8x16xbf16>
    %44 = vector.shape_cast %43 : vector<1x1x8x16xbf16> to vector<8x16xbf16>
    %c6 = arith.constant 6 : index
    %c0_49 = arith.constant 0 : index
    %c0_50 = arith.constant 0 : index
    %45 = vector.load %arg2[%c6, %c0_49, %c0_50] : memref<9x16x8xbf16, #tpu.memory_space<vmem>>, vector<1x16x8xbf16>
    %46 = vector.shape_cast %45 : vector<1x16x8xbf16> to vector<16x8xbf16>
    %cst_51 = arith.constant dense<0.000000e+00> : vector<16x16xf32>
    %47 = tpu.matmul %46, %44, %cst_51 {dimension_numbers = #tpu.dot_dimension_numbers<[1], [0], [0], [1], [0, 0, 1, 1], [], []>} : vector<16x8xbf16>, vector<8x16xbf16>, vector<16x16xf32> -> vector<16x16xf32>
    %48 = vector.broadcast %1 : vector<1x16xf32> to vector<16x16xf32>
    %49 = arith.mulf %47, %48 : vector<16x16xf32>
    %50 = arith.addf %42, %49 : vector<16x16xf32>
    %c0_52 = arith.constant 0 : index
    %c0_53 = arith.constant 0 : index
    %c0_54 = arith.constant 0 : index
    %c5_55 = arith.constant 5 : index
    %51 = vector.load %arg1[%c0_52, %c0_53, %c0_54, %c5_55] : memref<1x4x8x22xbf16, #tpu.memory_space<vmem>>, vector<1x1x8x16xbf16>
    %52 = vector.shape_cast %51 : vector<1x1x8x16xbf16> to vector<8x16xbf16>
    %c7 = arith.constant 7 : index
    %c0_56 = arith.constant 0 : index
    %c0_57 = arith.constant 0 : index
    %53 = vector.load %arg2[%c7, %c0_56, %c0_57] : memref<9x16x8xbf16, #tpu.memory_space<vmem>>, vector<1x16x8xbf16>
    %54 = vector.shape_cast %53 : vector<1x16x8xbf16> to vector<16x8xbf16>
    %cst_58 = arith.constant dense<0.000000e+00> : vector<16x16xf32>
    %55 = tpu.matmul %54, %52, %cst_58 {dimension_numbers = #tpu.dot_dimension_numbers<[1], [0], [0], [1], [0, 0, 1, 1], [], []>} : vector<16x8xbf16>, vector<8x16xbf16>, vector<16x16xf32> -> vector<16x16xf32>
    %56 = arith.addf %50, %55 : vector<16x16xf32>
    %c0_59 = arith.constant 0 : index
    %c1_60 = arith.constant 1 : index
    %c0_61 = arith.constant 0 : index
    %c5_62 = arith.constant 5 : index
    %57 = vector.load %arg1[%c0_59, %c1_60, %c0_61, %c5_62] : memref<1x4x8x22xbf16, #tpu.memory_space<vmem>>, vector<1x1x8x16xbf16>
    %58 = vector.shape_cast %57 : vector<1x1x8x16xbf16> to vector<8x16xbf16>
    %c8 = arith.constant 8 : index
    %c0_63 = arith.constant 0 : index
    %c0_64 = arith.constant 0 : index
    %59 = vector.load %arg2[%c8, %c0_63, %c0_64] : memref<9x16x8xbf16, #tpu.memory_space<vmem>>, vector<1x16x8xbf16>
    %60 = vector.shape_cast %59 : vector<1x16x8xbf16> to vector<16x8xbf16>
    %cst_65 = arith.constant dense<0.000000e+00> : vector<16x16xf32>
    %61 = tpu.matmul %60, %58, %cst_65 {dimension_numbers = #tpu.dot_dimension_numbers<[1], [0], [0], [1], [0, 0, 1, 1], [], []>} : vector<16x8xbf16>, vector<8x16xbf16>, vector<16x16xf32> -> vector<16x16xf32>
    %62 = arith.addf %56, %61 : vector<16x16xf32>
    %c0_66 = arith.constant 0 : index
    %c0_67 = arith.constant 0 : index
    %63 = vector.load %arg3[%c0_66, %c0_67] : memref<16x1xf32, #tpu.memory_space<vmem>>, vector<16x1xf32>
    %64 = vector.broadcast %63 : vector<16x1xf32> to vector<16x16xf32>
    %65 = arith.mulf %62, %64 : vector<16x16xf32>
    %c0_68 = arith.constant 0 : index
    %c0_69 = arith.constant 0 : index
    %66 = vector.load %arg4[%c0_68, %c0_69] : memref<16x1xf32, #tpu.memory_space<vmem>>, vector<16x1xf32>
    %67 = vector.broadcast %66 : vector<16x1xf32> to vector<16x16xf32>
    %68 = arith.addf %65, %67 : vector<16x16xf32>
    %cst_70 = arith.constant 0.000000e+00 : f32
    %69 = vector.broadcast %cst_70 : f32 to vector<16x16xf32>
    %70 = arith.maximumf %68, %69 : vector<16x16xf32>
    %c0_71 = arith.constant 0 : index
    %c0_72 = arith.constant 0 : index
    %c0_73 = arith.constant 0 : index
    %71 = vector.load %arg6[%c0_71, %c0_72, %c0_73] : memref<1x16x16xf32, #tpu.memory_space<vmem>>, vector<1x16x16xf32>
    %72 = vector.shape_cast %71 : vector<1x16x16xf32> to vector<16x16xf32>
    %73 = vector.shape_cast %70 : vector<16x16xf32> to vector<1x16x16xf32>
    tpu.vector_store %arg6[%c0_71, %c0_72, %c0_73], %73 {strides = array<i32>} : memref<1x16x16xf32, #tpu.memory_space<vmem>>, vector<1x16x16xf32>,
    return
  }
  func.func @transform_0(%arg0: i32) -> (i32, i32, i32, i32) {
    %c0_i32 = arith.constant 0 : i32
    %c0_i32_0 = arith.constant 0 : i32
    %c0_i32_1 = arith.constant 0 : i32
    %c0_i32_2 = arith.constant 0 : i32
    return %arg0, %c0_i32, %c0_i32_0, %c0_i32_1 : i32, i32, i32, i32
  }
  func.func @transform_1(%arg0: i32) -> (i32, i32, i32) {
    %c0_i32 = arith.constant 0 : i32
    %c0_i32_0 = arith.constant 0 : i32
    %c0_i32_1 = arith.constant 0 : i32
    %c0_i32_2 = arith.constant 0 : i32
    return %c0_i32, %c0_i32_0, %c0_i32_1 : i32, i32, i32
  }
  func.func @transform_2(%arg0: i32) -> (i32, i32) {
    %c0_i32 = arith.constant 0 : i32
    %c0_i32_0 = arith.constant 0 : i32
    %c0_i32_1 = arith.constant 0 : i32
    return %c0_i32, %c0_i32_0 : i32, i32
  }
  func.func @transform_3(%arg0: i32) -> (i32, i32) {
    %c0_i32 = arith.constant 0 : i32
    %c0_i32_0 = arith.constant 0 : i32
    %c0_i32_1 = arith.constant 0 : i32
    return %c0_i32, %c0_i32_0 : i32, i32
  }
  func.func @transform_4(%arg0: i32) -> (i32, i32, i32) {
    %c0_i32 = arith.constant 0 : i32
    %c0_i32_0 = arith.constant 0 : i32
    %c0_i32_1 = arith.constant 0 : i32
    %c0_i32_2 = arith.constant 0 : i32
    return %c0_i32, %c0_i32_0, %c0_i32_1 : i32, i32, i32
  }
  func.func @transform_5(%arg0: i32) -> (i32, i32, i32) {
    %c0_i32 = arith.constant 0 : i32
    %c0_i32_0 = arith.constant 0 : i32
    %c0_i32_1 = arith.constant 0 : i32
    return %arg0, %c0_i32, %c0_i32_0 : i32, i32, i32
  }
}

module attributes {stable_mosaic.version = 11 : i64} {
  func.func @_conv3x3_kernel(%arg0: i32, %arg1: memref<1x4x16x8xbf16, #tpu.memory_space<vmem>>, %arg2: memref<9x32x16xbf16, #tpu.memory_space<vmem>>, %arg3: memref<32x1xf32, #tpu.memory_space<vmem>>, %arg4: memref<32x1xf32, #tpu.memory_space<vmem>>, %arg5: memref<2x1x4xf32, #tpu.memory_space<vmem>>, %arg6: memref<1x32x4xf32, #tpu.memory_space<vmem>>) attributes {dimension_semantics = [#tpu.dimension_semantics<parallel>], iteration_bounds = array<i64: 2>, scalar_prefetch = 0 : i64, scratch_operands = 0 : i64, tpu.core_type = #tpu.core_type<tc>, window_params = [{transform_indices = @transform_0, window_bounds = array<i64: 1, 4, 16, 8>}, {pipeline_mode = #tpu.pipeline_mode<synchronous>, transform_indices = @transform_1, window_bounds = array<i64: 9, 32, 16>}, {pipeline_mode = #tpu.pipeline_mode<synchronous>, transform_indices = @transform_2, window_bounds = array<i64: 32, 1>}, {pipeline_mode = #tpu.pipeline_mode<synchronous>, transform_indices = @transform_3, window_bounds = array<i64: 32, 1>}, {pipeline_mode = #tpu.pipeline_mode<synchronous>, transform_indices = @transform_4, window_bounds = array<i64: 2, 1, 4>}, {transform_indices = @transform_5, window_bounds = array<i64: 1, 32, 4>}]} {
    %c0 = arith.constant 0 : index
    %c0_0 = arith.constant 0 : index
    %c0_1 = arith.constant 0 : index
    %0 = vector.load %arg5[%c0, %c0_0, %c0_1] : memref<2x1x4xf32, #tpu.memory_space<vmem>>, vector<1x1x4xf32>
    %1 = vector.shape_cast %0 : vector<1x1x4xf32> to vector<1x4xf32>
    %cst = arith.constant 0.000000e+00 : f32
    %2 = vector.broadcast %cst : f32 to vector<32x4xf32>
    %c0_2 = arith.constant 0 : index
    %c1 = arith.constant 1 : index
    %c0_3 = arith.constant 0 : index
    %c0_4 = arith.constant 0 : index
    %3 = vector.load %arg1[%c0_2, %c1, %c0_3, %c0_4] : memref<1x4x16x8xbf16, #tpu.memory_space<vmem>>, vector<1x1x16x4xbf16>
    %4 = vector.shape_cast %3 : vector<1x1x16x4xbf16> to vector<16x4xbf16>
    %c0_5 = arith.constant 0 : index
    %c0_6 = arith.constant 0 : index
    %c0_7 = arith.constant 0 : index
    %5 = vector.load %arg2[%c0_5, %c0_6, %c0_7] : memref<9x32x16xbf16, #tpu.memory_space<vmem>>, vector<1x32x16xbf16>
    %6 = vector.shape_cast %5 : vector<1x32x16xbf16> to vector<32x16xbf16>
    %cst_8 = arith.constant dense<0.000000e+00> : vector<32x4xf32>
    %7 = tpu.matmul %6, %4, %cst_8 {dimension_numbers = #tpu.dot_dimension_numbers<[1], [0], [0], [1], [0, 0, 1, 1], [], []>} : vector<32x16xbf16>, vector<16x4xbf16>, vector<32x4xf32> -> vector<32x4xf32>
    %8 = vector.broadcast %1 : vector<1x4xf32> to vector<32x4xf32>
    %9 = arith.mulf %7, %8 : vector<32x4xf32>
    %10 = arith.addf %2, %9 : vector<32x4xf32>
    %c0_9 = arith.constant 0 : index
    %c0_10 = arith.constant 0 : index
    %c0_11 = arith.constant 0 : index
    %c1_12 = arith.constant 1 : index
    %11 = vector.load %arg1[%c0_9, %c0_10, %c0_11, %c1_12] : memref<1x4x16x8xbf16, #tpu.memory_space<vmem>>, vector<1x1x16x4xbf16>
    %12 = vector.shape_cast %11 : vector<1x1x16x4xbf16> to vector<16x4xbf16>
    %c1_13 = arith.constant 1 : index
    %c0_14 = arith.constant 0 : index
    %c0_15 = arith.constant 0 : index
    %13 = vector.load %arg2[%c1_13, %c0_14, %c0_15] : memref<9x32x16xbf16, #tpu.memory_space<vmem>>, vector<1x32x16xbf16>
    %14 = vector.shape_cast %13 : vector<1x32x16xbf16> to vector<32x16xbf16>
    %cst_16 = arith.constant dense<0.000000e+00> : vector<32x4xf32>
    %15 = tpu.matmul %14, %12, %cst_16 {dimension_numbers = #tpu.dot_dimension_numbers<[1], [0], [0], [1], [0, 0, 1, 1], [], []>} : vector<32x16xbf16>, vector<16x4xbf16>, vector<32x4xf32> -> vector<32x4xf32>
    %16 = arith.addf %10, %15 : vector<32x4xf32>
    %c0_17 = arith.constant 0 : index
    %c1_18 = arith.constant 1 : index
    %c0_19 = arith.constant 0 : index
    %c1_20 = arith.constant 1 : index
    %17 = vector.load %arg1[%c0_17, %c1_18, %c0_19, %c1_20] : memref<1x4x16x8xbf16, #tpu.memory_space<vmem>>, vector<1x1x16x4xbf16>
    %18 = vector.shape_cast %17 : vector<1x1x16x4xbf16> to vector<16x4xbf16>
    %c2 = arith.constant 2 : index
    %c0_21 = arith.constant 0 : index
    %c0_22 = arith.constant 0 : index
    %19 = vector.load %arg2[%c2, %c0_21, %c0_22] : memref<9x32x16xbf16, #tpu.memory_space<vmem>>, vector<1x32x16xbf16>
    %20 = vector.shape_cast %19 : vector<1x32x16xbf16> to vector<32x16xbf16>
    %cst_23 = arith.constant dense<0.000000e+00> : vector<32x4xf32>
    %21 = tpu.matmul %20, %18, %cst_23 {dimension_numbers = #tpu.dot_dimension_numbers<[1], [0], [0], [1], [0, 0, 1, 1], [], []>} : vector<32x16xbf16>, vector<16x4xbf16>, vector<32x4xf32> -> vector<32x4xf32>
    %22 = arith.addf %16, %21 : vector<32x4xf32>
    %c0_24 = arith.constant 0 : index
    %c3 = arith.constant 3 : index
    %c0_25 = arith.constant 0 : index
    %c0_26 = arith.constant 0 : index
    %23 = vector.load %arg1[%c0_24, %c3, %c0_25, %c0_26] : memref<1x4x16x8xbf16, #tpu.memory_space<vmem>>, vector<1x1x16x4xbf16>
    %24 = vector.shape_cast %23 : vector<1x1x16x4xbf16> to vector<16x4xbf16>
    %c3_27 = arith.constant 3 : index
    %c0_28 = arith.constant 0 : index
    %c0_29 = arith.constant 0 : index
    %25 = vector.load %arg2[%c3_27, %c0_28, %c0_29] : memref<9x32x16xbf16, #tpu.memory_space<vmem>>, vector<1x32x16xbf16>
    %26 = vector.shape_cast %25 : vector<1x32x16xbf16> to vector<32x16xbf16>
    %cst_30 = arith.constant dense<0.000000e+00> : vector<32x4xf32>
    %27 = tpu.matmul %26, %24, %cst_30 {dimension_numbers = #tpu.dot_dimension_numbers<[1], [0], [0], [1], [0, 0, 1, 1], [], []>} : vector<32x16xbf16>, vector<16x4xbf16>, vector<32x4xf32> -> vector<32x4xf32>
    %28 = vector.broadcast %1 : vector<1x4xf32> to vector<32x4xf32>
    %29 = arith.mulf %27, %28 : vector<32x4xf32>
    %30 = arith.addf %22, %29 : vector<32x4xf32>
    %c0_31 = arith.constant 0 : index
    %c2_32 = arith.constant 2 : index
    %c0_33 = arith.constant 0 : index
    %c1_34 = arith.constant 1 : index
    %31 = vector.load %arg1[%c0_31, %c2_32, %c0_33, %c1_34] : memref<1x4x16x8xbf16, #tpu.memory_space<vmem>>, vector<1x1x16x4xbf16>
    %32 = vector.shape_cast %31 : vector<1x1x16x4xbf16> to vector<16x4xbf16>
    %c4 = arith.constant 4 : index
    %c0_35 = arith.constant 0 : index
    %c0_36 = arith.constant 0 : index
    %33 = vector.load %arg2[%c4, %c0_35, %c0_36] : memref<9x32x16xbf16, #tpu.memory_space<vmem>>, vector<1x32x16xbf16>
    %34 = vector.shape_cast %33 : vector<1x32x16xbf16> to vector<32x16xbf16>
    %cst_37 = arith.constant dense<0.000000e+00> : vector<32x4xf32>
    %35 = tpu.matmul %34, %32, %cst_37 {dimension_numbers = #tpu.dot_dimension_numbers<[1], [0], [0], [1], [0, 0, 1, 1], [], []>} : vector<32x16xbf16>, vector<16x4xbf16>, vector<32x4xf32> -> vector<32x4xf32>
    %36 = arith.addf %30, %35 : vector<32x4xf32>
    %c0_38 = arith.constant 0 : index
    %c3_39 = arith.constant 3 : index
    %c0_40 = arith.constant 0 : index
    %c1_41 = arith.constant 1 : index
    %37 = vector.load %arg1[%c0_38, %c3_39, %c0_40, %c1_41] : memref<1x4x16x8xbf16, #tpu.memory_space<vmem>>, vector<1x1x16x4xbf16>
    %38 = vector.shape_cast %37 : vector<1x1x16x4xbf16> to vector<16x4xbf16>
    %c5 = arith.constant 5 : index
    %c0_42 = arith.constant 0 : index
    %c0_43 = arith.constant 0 : index
    %39 = vector.load %arg2[%c5, %c0_42, %c0_43] : memref<9x32x16xbf16, #tpu.memory_space<vmem>>, vector<1x32x16xbf16>
    %40 = vector.shape_cast %39 : vector<1x32x16xbf16> to vector<32x16xbf16>
    %cst_44 = arith.constant dense<0.000000e+00> : vector<32x4xf32>
    %41 = tpu.matmul %40, %38, %cst_44 {dimension_numbers = #tpu.dot_dimension_numbers<[1], [0], [0], [1], [0, 0, 1, 1], [], []>} : vector<32x16xbf16>, vector<16x4xbf16>, vector<32x4xf32> -> vector<32x4xf32>
    %42 = arith.addf %36, %41 : vector<32x4xf32>
    %c0_45 = arith.constant 0 : index
    %c1_46 = arith.constant 1 : index
    %c0_47 = arith.constant 0 : index
    %c2_48 = arith.constant 2 : index
    %43 = vector.load %arg1[%c0_45, %c1_46, %c0_47, %c2_48] : memref<1x4x16x8xbf16, #tpu.memory_space<vmem>>, vector<1x1x16x4xbf16>
    %44 = vector.shape_cast %43 : vector<1x1x16x4xbf16> to vector<16x4xbf16>
    %c6 = arith.constant 6 : index
    %c0_49 = arith.constant 0 : index
    %c0_50 = arith.constant 0 : index
    %45 = vector.load %arg2[%c6, %c0_49, %c0_50] : memref<9x32x16xbf16, #tpu.memory_space<vmem>>, vector<1x32x16xbf16>
    %46 = vector.shape_cast %45 : vector<1x32x16xbf16> to vector<32x16xbf16>
    %cst_51 = arith.constant dense<0.000000e+00> : vector<32x4xf32>
    %47 = tpu.matmul %46, %44, %cst_51 {dimension_numbers = #tpu.dot_dimension_numbers<[1], [0], [0], [1], [0, 0, 1, 1], [], []>} : vector<32x16xbf16>, vector<16x4xbf16>, vector<32x4xf32> -> vector<32x4xf32>
    %48 = vector.broadcast %1 : vector<1x4xf32> to vector<32x4xf32>
    %49 = arith.mulf %47, %48 : vector<32x4xf32>
    %50 = arith.addf %42, %49 : vector<32x4xf32>
    %c0_52 = arith.constant 0 : index
    %c0_53 = arith.constant 0 : index
    %c0_54 = arith.constant 0 : index
    %c3_55 = arith.constant 3 : index
    %51 = vector.load %arg1[%c0_52, %c0_53, %c0_54, %c3_55] : memref<1x4x16x8xbf16, #tpu.memory_space<vmem>>, vector<1x1x16x4xbf16>
    %52 = vector.shape_cast %51 : vector<1x1x16x4xbf16> to vector<16x4xbf16>
    %c7 = arith.constant 7 : index
    %c0_56 = arith.constant 0 : index
    %c0_57 = arith.constant 0 : index
    %53 = vector.load %arg2[%c7, %c0_56, %c0_57] : memref<9x32x16xbf16, #tpu.memory_space<vmem>>, vector<1x32x16xbf16>
    %54 = vector.shape_cast %53 : vector<1x32x16xbf16> to vector<32x16xbf16>
    %cst_58 = arith.constant dense<0.000000e+00> : vector<32x4xf32>
    %55 = tpu.matmul %54, %52, %cst_58 {dimension_numbers = #tpu.dot_dimension_numbers<[1], [0], [0], [1], [0, 0, 1, 1], [], []>} : vector<32x16xbf16>, vector<16x4xbf16>, vector<32x4xf32> -> vector<32x4xf32>
    %56 = arith.addf %50, %55 : vector<32x4xf32>
    %c0_59 = arith.constant 0 : index
    %c1_60 = arith.constant 1 : index
    %c0_61 = arith.constant 0 : index
    %c3_62 = arith.constant 3 : index
    %57 = vector.load %arg1[%c0_59, %c1_60, %c0_61, %c3_62] : memref<1x4x16x8xbf16, #tpu.memory_space<vmem>>, vector<1x1x16x4xbf16>
    %58 = vector.shape_cast %57 : vector<1x1x16x4xbf16> to vector<16x4xbf16>
    %c8 = arith.constant 8 : index
    %c0_63 = arith.constant 0 : index
    %c0_64 = arith.constant 0 : index
    %59 = vector.load %arg2[%c8, %c0_63, %c0_64] : memref<9x32x16xbf16, #tpu.memory_space<vmem>>, vector<1x32x16xbf16>
    %60 = vector.shape_cast %59 : vector<1x32x16xbf16> to vector<32x16xbf16>
    %cst_65 = arith.constant dense<0.000000e+00> : vector<32x4xf32>
    %61 = tpu.matmul %60, %58, %cst_65 {dimension_numbers = #tpu.dot_dimension_numbers<[1], [0], [0], [1], [0, 0, 1, 1], [], []>} : vector<32x16xbf16>, vector<16x4xbf16>, vector<32x4xf32> -> vector<32x4xf32>
    %62 = arith.addf %56, %61 : vector<32x4xf32>
    %c0_66 = arith.constant 0 : index
    %c0_67 = arith.constant 0 : index
    %63 = vector.load %arg3[%c0_66, %c0_67] : memref<32x1xf32, #tpu.memory_space<vmem>>, vector<32x1xf32>
    %64 = vector.broadcast %63 : vector<32x1xf32> to vector<32x4xf32>
    %65 = arith.mulf %62, %64 : vector<32x4xf32>
    %c0_68 = arith.constant 0 : index
    %c0_69 = arith.constant 0 : index
    %66 = vector.load %arg4[%c0_68, %c0_69] : memref<32x1xf32, #tpu.memory_space<vmem>>, vector<32x1xf32>
    %67 = vector.broadcast %66 : vector<32x1xf32> to vector<32x4xf32>
    %68 = arith.addf %65, %67 : vector<32x4xf32>
    %cst_70 = arith.constant 0.000000e+00 : f32
    %69 = vector.broadcast %cst_70 : f32 to vector<32x4xf32>
    %70 = arith.maximumf %68, %69 : vector<32x4xf32>
    %c0_71 = arith.constant 0 : index
    %c0_72 = arith.constant 0 : index
    %c0_73 = arith.constant 0 : index
    %71 = vector.load %arg6[%c0_71, %c0_72, %c0_73] : memref<1x32x4xf32, #tpu.memory_space<vmem>>, vector<1x32x4xf32>
    %72 = vector.shape_cast %71 : vector<1x32x4xf32> to vector<32x4xf32>
    %73 = vector.shape_cast %70 : vector<32x4xf32> to vector<1x32x4xf32>
    tpu.vector_store %arg6[%c0_71, %c0_72, %c0_73], %73 {strides = array<i32>} : memref<1x32x4xf32, #tpu.memory_space<vmem>>, vector<1x32x4xf32>,
    return
  }
  func.func @transform_0(%arg0: i32) -> (i32, i32, i32, i32) {
    %c0_i32 = arith.constant 0 : i32
    %c0_i32_0 = arith.constant 0 : i32
    %c0_i32_1 = arith.constant 0 : i32
    %c0_i32_2 = arith.constant 0 : i32
    return %arg0, %c0_i32, %c0_i32_0, %c0_i32_1 : i32, i32, i32, i32
  }
  func.func @transform_1(%arg0: i32) -> (i32, i32, i32) {
    %c0_i32 = arith.constant 0 : i32
    %c0_i32_0 = arith.constant 0 : i32
    %c0_i32_1 = arith.constant 0 : i32
    %c0_i32_2 = arith.constant 0 : i32
    return %c0_i32, %c0_i32_0, %c0_i32_1 : i32, i32, i32
  }
  func.func @transform_2(%arg0: i32) -> (i32, i32) {
    %c0_i32 = arith.constant 0 : i32
    %c0_i32_0 = arith.constant 0 : i32
    %c0_i32_1 = arith.constant 0 : i32
    return %c0_i32, %c0_i32_0 : i32, i32
  }
  func.func @transform_3(%arg0: i32) -> (i32, i32) {
    %c0_i32 = arith.constant 0 : i32
    %c0_i32_0 = arith.constant 0 : i32
    %c0_i32_1 = arith.constant 0 : i32
    return %c0_i32, %c0_i32_0 : i32, i32
  }
  func.func @transform_4(%arg0: i32) -> (i32, i32, i32) {
    %c0_i32 = arith.constant 0 : i32
    %c0_i32_0 = arith.constant 0 : i32
    %c0_i32_1 = arith.constant 0 : i32
    %c0_i32_2 = arith.constant 0 : i32
    return %c0_i32, %c0_i32_0, %c0_i32_1 : i32, i32, i32
  }
  func.func @transform_5(%arg0: i32) -> (i32, i32, i32) {
    %c0_i32 = arith.constant 0 : i32
    %c0_i32_0 = arith.constant 0 : i32
    %c0_i32_1 = arith.constant 0 : i32
    return %arg0, %c0_i32, %c0_i32_0 : i32, i32, i32
  }
}

module attributes {stable_mosaic.version = 11 : i64} {
  func.func @_conv3x3_kernel(%arg0: i32, %arg1: memref<1x4x32x4xbf16, #tpu.memory_space<vmem>>, %arg2: memref<9x64x32xbf16, #tpu.memory_space<vmem>>, %arg3: memref<64x1xf32, #tpu.memory_space<vmem>>, %arg4: memref<64x1xf32, #tpu.memory_space<vmem>>, %arg5: memref<2x1x1xf32, #tpu.memory_space<vmem>>, %arg6: memref<1x64x1xf32, #tpu.memory_space<vmem>>) attributes {dimension_semantics = [#tpu.dimension_semantics<parallel>], iteration_bounds = array<i64: 2>, scalar_prefetch = 0 : i64, scratch_operands = 0 : i64, tpu.core_type = #tpu.core_type<tc>, window_params = [{transform_indices = @transform_0, window_bounds = array<i64: 1, 4, 32, 4>}, {pipeline_mode = #tpu.pipeline_mode<synchronous>, transform_indices = @transform_1, window_bounds = array<i64: 9, 64, 32>}, {pipeline_mode = #tpu.pipeline_mode<synchronous>, transform_indices = @transform_2, window_bounds = array<i64: 64, 1>}, {pipeline_mode = #tpu.pipeline_mode<synchronous>, transform_indices = @transform_3, window_bounds = array<i64: 64, 1>}, {pipeline_mode = #tpu.pipeline_mode<synchronous>, transform_indices = @transform_4, window_bounds = array<i64: 2, 1, 1>}, {transform_indices = @transform_5, window_bounds = array<i64: 1, 64, 1>}]} {
    %c0 = arith.constant 0 : index
    %c0_0 = arith.constant 0 : index
    %c0_1 = arith.constant 0 : index
    %0 = vector.load %arg5[%c0, %c0_0, %c0_1] : memref<2x1x1xf32, #tpu.memory_space<vmem>>, vector<1x1x1xf32>
    %1 = vector.shape_cast %0 : vector<1x1x1xf32> to vector<1x1xf32>
    %cst = arith.constant 0.000000e+00 : f32
    %2 = vector.broadcast %cst : f32 to vector<64x1xf32>
    %c0_2 = arith.constant 0 : index
    %c1 = arith.constant 1 : index
    %c0_3 = arith.constant 0 : index
    %c0_4 = arith.constant 0 : index
    %3 = vector.load %arg1[%c0_2, %c1, %c0_3, %c0_4] : memref<1x4x32x4xbf16, #tpu.memory_space<vmem>>, vector<1x1x32x1xbf16>
    %4 = vector.shape_cast %3 : vector<1x1x32x1xbf16> to vector<32x1xbf16>
    %c0_5 = arith.constant 0 : index
    %c0_6 = arith.constant 0 : index
    %c0_7 = arith.constant 0 : index
    %5 = vector.load %arg2[%c0_5, %c0_6, %c0_7] : memref<9x64x32xbf16, #tpu.memory_space<vmem>>, vector<1x64x32xbf16>
    %6 = vector.shape_cast %5 : vector<1x64x32xbf16> to vector<64x32xbf16>
    %cst_8 = arith.constant dense<0.000000e+00> : vector<64x1xf32>
    %7 = tpu.matmul %6, %4, %cst_8 {dimension_numbers = #tpu.dot_dimension_numbers<[1], [0], [0], [1], [0, 0, 1, 1], [], []>} : vector<64x32xbf16>, vector<32x1xbf16>, vector<64x1xf32> -> vector<64x1xf32>
    %8 = vector.broadcast %1 : vector<1x1xf32> to vector<64x1xf32>
    %9 = arith.mulf %7, %8 : vector<64x1xf32>
    %10 = arith.addf %2, %9 : vector<64x1xf32>
    %c0_9 = arith.constant 0 : index
    %c0_10 = arith.constant 0 : index
    %c0_11 = arith.constant 0 : index
    %c1_12 = arith.constant 1 : index
    %11 = vector.load %arg1[%c0_9, %c0_10, %c0_11, %c1_12] : memref<1x4x32x4xbf16, #tpu.memory_space<vmem>>, vector<1x1x32x1xbf16>
    %12 = vector.shape_cast %11 : vector<1x1x32x1xbf16> to vector<32x1xbf16>
    %c1_13 = arith.constant 1 : index
    %c0_14 = arith.constant 0 : index
    %c0_15 = arith.constant 0 : index
    %13 = vector.load %arg2[%c1_13, %c0_14, %c0_15] : memref<9x64x32xbf16, #tpu.memory_space<vmem>>, vector<1x64x32xbf16>
    %14 = vector.shape_cast %13 : vector<1x64x32xbf16> to vector<64x32xbf16>
    %cst_16 = arith.constant dense<0.000000e+00> : vector<64x1xf32>
    %15 = tpu.matmul %14, %12, %cst_16 {dimension_numbers = #tpu.dot_dimension_numbers<[1], [0], [0], [1], [0, 0, 1, 1], [], []>} : vector<64x32xbf16>, vector<32x1xbf16>, vector<64x1xf32> -> vector<64x1xf32>
    %16 = arith.addf %10, %15 : vector<64x1xf32>
    %c0_17 = arith.constant 0 : index
    %c1_18 = arith.constant 1 : index
    %c0_19 = arith.constant 0 : index
    %c1_20 = arith.constant 1 : index
    %17 = vector.load %arg1[%c0_17, %c1_18, %c0_19, %c1_20] : memref<1x4x32x4xbf16, #tpu.memory_space<vmem>>, vector<1x1x32x1xbf16>
    %18 = vector.shape_cast %17 : vector<1x1x32x1xbf16> to vector<32x1xbf16>
    %c2 = arith.constant 2 : index
    %c0_21 = arith.constant 0 : index
    %c0_22 = arith.constant 0 : index
    %19 = vector.load %arg2[%c2, %c0_21, %c0_22] : memref<9x64x32xbf16, #tpu.memory_space<vmem>>, vector<1x64x32xbf16>
    %20 = vector.shape_cast %19 : vector<1x64x32xbf16> to vector<64x32xbf16>
    %cst_23 = arith.constant dense<0.000000e+00> : vector<64x1xf32>
    %21 = tpu.matmul %20, %18, %cst_23 {dimension_numbers = #tpu.dot_dimension_numbers<[1], [0], [0], [1], [0, 0, 1, 1], [], []>} : vector<64x32xbf16>, vector<32x1xbf16>, vector<64x1xf32> -> vector<64x1xf32>
    %22 = arith.addf %16, %21 : vector<64x1xf32>
    %c0_24 = arith.constant 0 : index
    %c3 = arith.constant 3 : index
    %c0_25 = arith.constant 0 : index
    %c0_26 = arith.constant 0 : index
    %23 = vector.load %arg1[%c0_24, %c3, %c0_25, %c0_26] : memref<1x4x32x4xbf16, #tpu.memory_space<vmem>>, vector<1x1x32x1xbf16>
    %24 = vector.shape_cast %23 : vector<1x1x32x1xbf16> to vector<32x1xbf16>
    %c3_27 = arith.constant 3 : index
    %c0_28 = arith.constant 0 : index
    %c0_29 = arith.constant 0 : index
    %25 = vector.load %arg2[%c3_27, %c0_28, %c0_29] : memref<9x64x32xbf16, #tpu.memory_space<vmem>>, vector<1x64x32xbf16>
    %26 = vector.shape_cast %25 : vector<1x64x32xbf16> to vector<64x32xbf16>
    %cst_30 = arith.constant dense<0.000000e+00> : vector<64x1xf32>
    %27 = tpu.matmul %26, %24, %cst_30 {dimension_numbers = #tpu.dot_dimension_numbers<[1], [0], [0], [1], [0, 0, 1, 1], [], []>} : vector<64x32xbf16>, vector<32x1xbf16>, vector<64x1xf32> -> vector<64x1xf32>
    %28 = vector.broadcast %1 : vector<1x1xf32> to vector<64x1xf32>
    %29 = arith.mulf %27, %28 : vector<64x1xf32>
    %30 = arith.addf %22, %29 : vector<64x1xf32>
    %c0_31 = arith.constant 0 : index
    %c2_32 = arith.constant 2 : index
    %c0_33 = arith.constant 0 : index
    %c1_34 = arith.constant 1 : index
    %31 = vector.load %arg1[%c0_31, %c2_32, %c0_33, %c1_34] : memref<1x4x32x4xbf16, #tpu.memory_space<vmem>>, vector<1x1x32x1xbf16>
    %32 = vector.shape_cast %31 : vector<1x1x32x1xbf16> to vector<32x1xbf16>
    %c4 = arith.constant 4 : index
    %c0_35 = arith.constant 0 : index
    %c0_36 = arith.constant 0 : index
    %33 = vector.load %arg2[%c4, %c0_35, %c0_36] : memref<9x64x32xbf16, #tpu.memory_space<vmem>>, vector<1x64x32xbf16>
    %34 = vector.shape_cast %33 : vector<1x64x32xbf16> to vector<64x32xbf16>
    %cst_37 = arith.constant dense<0.000000e+00> : vector<64x1xf32>
    %35 = tpu.matmul %34, %32, %cst_37 {dimension_numbers = #tpu.dot_dimension_numbers<[1], [0], [0], [1], [0, 0, 1, 1], [], []>} : vector<64x32xbf16>, vector<32x1xbf16>, vector<64x1xf32> -> vector<64x1xf32>
    %36 = arith.addf %30, %35 : vector<64x1xf32>
    %c0_38 = arith.constant 0 : index
    %c3_39 = arith.constant 3 : index
    %c0_40 = arith.constant 0 : index
    %c1_41 = arith.constant 1 : index
    %37 = vector.load %arg1[%c0_38, %c3_39, %c0_40, %c1_41] : memref<1x4x32x4xbf16, #tpu.memory_space<vmem>>, vector<1x1x32x1xbf16>
    %38 = vector.shape_cast %37 : vector<1x1x32x1xbf16> to vector<32x1xbf16>
    %c5 = arith.constant 5 : index
    %c0_42 = arith.constant 0 : index
    %c0_43 = arith.constant 0 : index
    %39 = vector.load %arg2[%c5, %c0_42, %c0_43] : memref<9x64x32xbf16, #tpu.memory_space<vmem>>, vector<1x64x32xbf16>
    %40 = vector.shape_cast %39 : vector<1x64x32xbf16> to vector<64x32xbf16>
    %cst_44 = arith.constant dense<0.000000e+00> : vector<64x1xf32>
    %41 = tpu.matmul %40, %38, %cst_44 {dimension_numbers = #tpu.dot_dimension_numbers<[1], [0], [0], [1], [0, 0, 1, 1], [], []>} : vector<64x32xbf16>, vector<32x1xbf16>, vector<64x1xf32> -> vector<64x1xf32>
    %42 = arith.addf %36, %41 : vector<64x1xf32>
    %c0_45 = arith.constant 0 : index
    %c1_46 = arith.constant 1 : index
    %c0_47 = arith.constant 0 : index
    %c1_48 = arith.constant 1 : index
    %43 = vector.load %arg1[%c0_45, %c1_46, %c0_47, %c1_48] : memref<1x4x32x4xbf16, #tpu.memory_space<vmem>>, vector<1x1x32x1xbf16>
    %44 = vector.shape_cast %43 : vector<1x1x32x1xbf16> to vector<32x1xbf16>
    %c6 = arith.constant 6 : index
    %c0_49 = arith.constant 0 : index
    %c0_50 = arith.constant 0 : index
    %45 = vector.load %arg2[%c6, %c0_49, %c0_50] : memref<9x64x32xbf16, #tpu.memory_space<vmem>>, vector<1x64x32xbf16>
    %46 = vector.shape_cast %45 : vector<1x64x32xbf16> to vector<64x32xbf16>
    %cst_51 = arith.constant dense<0.000000e+00> : vector<64x1xf32>
    %47 = tpu.matmul %46, %44, %cst_51 {dimension_numbers = #tpu.dot_dimension_numbers<[1], [0], [0], [1], [0, 0, 1, 1], [], []>} : vector<64x32xbf16>, vector<32x1xbf16>, vector<64x1xf32> -> vector<64x1xf32>
    %48 = vector.broadcast %1 : vector<1x1xf32> to vector<64x1xf32>
    %49 = arith.mulf %47, %48 : vector<64x1xf32>
    %50 = arith.addf %42, %49 : vector<64x1xf32>
    %c0_52 = arith.constant 0 : index
    %c0_53 = arith.constant 0 : index
    %c0_54 = arith.constant 0 : index
    %c2_55 = arith.constant 2 : index
    %51 = vector.load %arg1[%c0_52, %c0_53, %c0_54, %c2_55] : memref<1x4x32x4xbf16, #tpu.memory_space<vmem>>, vector<1x1x32x1xbf16>
    %52 = vector.shape_cast %51 : vector<1x1x32x1xbf16> to vector<32x1xbf16>
    %c7 = arith.constant 7 : index
    %c0_56 = arith.constant 0 : index
    %c0_57 = arith.constant 0 : index
    %53 = vector.load %arg2[%c7, %c0_56, %c0_57] : memref<9x64x32xbf16, #tpu.memory_space<vmem>>, vector<1x64x32xbf16>
    %54 = vector.shape_cast %53 : vector<1x64x32xbf16> to vector<64x32xbf16>
    %cst_58 = arith.constant dense<0.000000e+00> : vector<64x1xf32>
    %55 = tpu.matmul %54, %52, %cst_58 {dimension_numbers = #tpu.dot_dimension_numbers<[1], [0], [0], [1], [0, 0, 1, 1], [], []>} : vector<64x32xbf16>, vector<32x1xbf16>, vector<64x1xf32> -> vector<64x1xf32>
    %56 = arith.addf %50, %55 : vector<64x1xf32>
    %c0_59 = arith.constant 0 : index
    %c1_60 = arith.constant 1 : index
    %c0_61 = arith.constant 0 : index
    %c2_62 = arith.constant 2 : index
    %57 = vector.load %arg1[%c0_59, %c1_60, %c0_61, %c2_62] : memref<1x4x32x4xbf16, #tpu.memory_space<vmem>>, vector<1x1x32x1xbf16>
    %58 = vector.shape_cast %57 : vector<1x1x32x1xbf16> to vector<32x1xbf16>
    %c8 = arith.constant 8 : index
    %c0_63 = arith.constant 0 : index
    %c0_64 = arith.constant 0 : index
    %59 = vector.load %arg2[%c8, %c0_63, %c0_64] : memref<9x64x32xbf16, #tpu.memory_space<vmem>>, vector<1x64x32xbf16>
    %60 = vector.shape_cast %59 : vector<1x64x32xbf16> to vector<64x32xbf16>
    %cst_65 = arith.constant dense<0.000000e+00> : vector<64x1xf32>
    %61 = tpu.matmul %60, %58, %cst_65 {dimension_numbers = #tpu.dot_dimension_numbers<[1], [0], [0], [1], [0, 0, 1, 1], [], []>} : vector<64x32xbf16>, vector<32x1xbf16>, vector<64x1xf32> -> vector<64x1xf32>
    %62 = arith.addf %56, %61 : vector<64x1xf32>
    %c0_66 = arith.constant 0 : index
    %c0_67 = arith.constant 0 : index
    %63 = vector.load %arg3[%c0_66, %c0_67] : memref<64x1xf32, #tpu.memory_space<vmem>>, vector<64x1xf32>
    %64 = arith.mulf %62, %63 : vector<64x1xf32>
    %c0_68 = arith.constant 0 : index
    %c0_69 = arith.constant 0 : index
    %65 = vector.load %arg4[%c0_68, %c0_69] : memref<64x1xf32, #tpu.memory_space<vmem>>, vector<64x1xf32>
    %66 = arith.addf %64, %65 : vector<64x1xf32>
    %cst_70 = arith.constant 0.000000e+00 : f32
    %67 = vector.broadcast %cst_70 : f32 to vector<64x1xf32>
    %68 = arith.maximumf %66, %67 : vector<64x1xf32>
    %c0_71 = arith.constant 0 : index
    %c0_72 = arith.constant 0 : index
    %c0_73 = arith.constant 0 : index
    %69 = vector.load %arg6[%c0_71, %c0_72, %c0_73] : memref<1x64x1xf32, #tpu.memory_space<vmem>>, vector<1x64x1xf32>
    %70 = vector.shape_cast %69 : vector<1x64x1xf32> to vector<64x1xf32>
    %71 = vector.shape_cast %68 : vector<64x1xf32> to vector<1x64x1xf32>
    tpu.vector_store %arg6[%c0_71, %c0_72, %c0_73], %71 {strides = array<i32>} : memref<1x64x1xf32, #tpu.memory_space<vmem>>, vector<1x64x1xf32>,
    return
  }
  func.func @transform_0(%arg0: i32) -> (i32, i32, i32, i32) {
    %c0_i32 = arith.constant 0 : i32
    %c0_i32_0 = arith.constant 0 : i32
    %c0_i32_1 = arith.constant 0 : i32
    %c0_i32_2 = arith.constant 0 : i32
    return %arg0, %c0_i32, %c0_i32_0, %c0_i32_1 : i32, i32, i32, i32
  }
  func.func @transform_1(%arg0: i32) -> (i32, i32, i32) {
    %c0_i32 = arith.constant 0 : i32
    %c0_i32_0 = arith.constant 0 : i32
    %c0_i32_1 = arith.constant 0 : i32
    %c0_i32_2 = arith.constant 0 : i32
    return %c0_i32, %c0_i32_0, %c0_i32_1 : i32, i32, i32
  }
  func.func @transform_2(%arg0: i32) -> (i32, i32) {
    %c0_i32 = arith.constant 0 : i32
    %c0_i32_0 = arith.constant 0 : i32
    %c0_i32_1 = arith.constant 0 : i32
    return %c0_i32, %c0_i32_0 : i32, i32
  }
  func.func @transform_3(%arg0: i32) -> (i32, i32) {
    %c0_i32 = arith.constant 0 : i32
    %c0_i32_0 = arith.constant 0 : i32
    %c0_i32_1 = arith.constant 0 : i32
    return %c0_i32, %c0_i32_0 : i32, i32
  }
  func.func @transform_4(%arg0: i32) -> (i32, i32, i32) {
    %c0_i32 = arith.constant 0 : i32
    %c0_i32_0 = arith.constant 0 : i32
    %c0_i32_1 = arith.constant 0 : i32
    %c0_i32_2 = arith.constant 0 : i32
    return %c0_i32, %c0_i32_0, %c0_i32_1 : i32, i32, i32
  }
  func.func @transform_5(%arg0: i32) -> (i32, i32, i32) {
    %c0_i32 = arith.constant 0 : i32
    %c0_i32_0 = arith.constant 0 : i32
    %c0_i32_1 = arith.constant 0 : i32
    return %arg0, %c0_i32, %c0_i32_0 : i32, i32, i32
  }
}

</mosaic_0001>

<bundles_post_ra>
// kernel: backbone_base_forward.6
= control target key start
LH: loop header
LB: loop body
LE: loop exit
PB: predicated region body
PF: predicated region fallthrough
CT: control target
= control target key end

     0   :  { %s620_s18 = smov 0   ;;  %s698_s0 = inlined_call_operand.vmem [shape: bf16[2,1,8,82], index: 0, kind: input, shape index: {}]   ;;  %s699_s1 = inlined_call_operand.vmem [shape: bf16[9,8,8], index: 1, kind: input, shape index: {}]   ;;  %s700_s2 = inlined_call_operand.vmem [shape: f32[8,1], index: 2, kind: input, shape index: {}]   ;;  %s701_s3 = inlined_call_operand.vmem [shape: f32[8,1], index: 3, kind: input, shape index: {}]   ;;  %s702_s4 = inlined_call_operand.vmem [shape: f32[2,1,64], index: 4, kind: input, shape index: {}]   ;;  %s703_s5 = inlined_call_operand.vmem [shape: f32[2,8,64], index: 5, kind: output, shape index: {}]  }
   0x1 LB: > { %s525_s19 = sadd.s32 4294967295, %s579_s18   ;;  %p529_p0 = scmp.ge.s32.totalorder %s579_s18, 1  ;;  %s579_s18 = sphi %s620_s18, %s15_s18  }
   0x2   : > { %p186_p1 = scmp.lt.s32.totalorder %s579_s18, 3 }
   0x4   : > { %p187_p2 = pnand %p529_p0, %p186_p1 }
   0x5   : > { %p212_p3 = scmp.lt.s32.totalorder (!%p187_p2), %s525_s19, 1  ;;  %s581_s24 = smov (!%p187_p2), 120  }
   0x6   : > { %190 = sbr.rel (%p187_p2) target bundleno = 305 (0x131), region = 40  ;;  %s582_s25 = smov (!%p187_p2), 126  }
   0x7   : > { %s583_s26 = smov (!%p187_p2), 112   ;;  %s584_s27 = smov (!%p187_p2), 119  }
   0x8   : > { %s585_s28 = smov (!%p187_p2), 127   ;;  %s586_s29 = smov (!%p187_p2), 118  }
   0x9   : > { %s587_s30 = smov (!%p187_p2), 111   ;;  %s588_s6 = smov (!%p187_p2), 110  }
   0xb   : > { %s705_s19 = smov (!%p212_p3, %s525_s19), 1  ;;  %vm230_vm0 = vcmask 1043456   ;;  %v225_v4 = vld [vmem:[%s699_s1] sm:$0xf]  ;;  %vm226_vm1 = vcmask 64512   ;;  %v589_v8 = vmov 0  }
   0xc   : > { %s530_s20 = sshll.u32 %s705_s19, 2  ;;  %v462_v6 = vld [vmem:[%s701_s3] sm:$0xff]  ;;  %570 = vset.pattern.permute.xlu0 %v589_v8  ;;  %569 = vset.pattern.permute.xlu2 %v589_v8  ;;  %v536_v14 = vld [vmem:[%s699_s1 + $0x8] sm:$0xf]  ;;  %v538_v15 = vld [vmem:[%s699_s1 + $0xc] sm:$0xf] }
   0xd   : > { %s215_s23 = scalar_lea.vmem %s698_s0, %s530_s20  ;;  %v455_v7 = vld [vmem:[%s700_s2] sm:$0xff]  ;;  %v540_v23 = vld [vmem:[%s699_s1 + $0x10] sm:$0xf]  ;;  %v544_v28 = vld [vmem:[%s699_s1 + $0x18] sm:$0xf]  ;;  %s531_s10 = sshll.u32 %s705_s19, 3 }
   0xe   : > { %v224_v0 = vld [vmem:[%s215_s23] sm:$0xf]  ;;  %v534_v22 = vld [vmem:[%s699_s1 + $0x4] sm:$0xf]  ;;  %v546_v29 = vld [vmem:[%s699_s1 + $0x1c] sm:$0xf]  ;;  %s219_s13 = scalar_lea.vmem %s703_s5, %s531_s10 }
   0xf   : > { %v255_v1 = vunpack.c.l.b16 %v224_v0  ;;  %v232_v2 = vsel %vm230_vm0, %v224_v0, 0  ;;  %v542_v30 = vld [vmem:[%s699_s1 + $0x14] sm:$0xf]  ;;  %v548_v31 = vld [vmem:[%s699_s1 + $0x20] sm:$0xf]  ;;  %vm470_vm2 = vcmask 523264  }
  0x10   : > { %241 = vmatpush.bf16.msra.mxu0 %v232_v2  ;;  %v571_v36 = vld [vmem:[%s702_s4] ss:$0 sm:$0xff]  ;;  %v572_v39 = vld [vmem:[%s702_s4 + $0x1] ss:$0 sm:$0xff] }
  0x11   : > { %v256_v3 = vpack.c.b16 %v255_v1, %v255_v1 }
  0x13   : > { %309 = vrot.lane.b32.xlu1 %v256_v3, %s581_s24  ;;  %281 = vrot.lane.b32.xlu0 %v256_v3, %s582_s25 }
  0x14   : > { %383 = vrot.lane.b32.xlu2 %v256_v3, %s583_s26  ;;  %533 = vmatmul.msk.bf16.vlgmr.msra.gmra.mxu0 %vm226_vm1, %v225_v4 }
  0x1b   : > { %334 = vrot.lane.b32.xlu1 %v256_v3, %s584_s27  ;;  %257 = vrot.lane.b32.xlu0 %v256_v3, %s585_s28 }
  0x1c   : > { %358 = vrot.lane.b32.xlu2 %v256_v3, %s586_s29 }
  0x23   : > { %408 = vrot.lane.b32.xlu0 %v256_v3, %s587_s30  ;;  %432 = vrot.lane.b32.xlu1 %v256_v3, %s588_s6 }
  0x24   : > { %458 = vperm.xlu2 %569, %v455_v7  }
  0x2b   : > { %465 = vperm.xlu0 %570, %v462_v6  }
  0x6e   : > { %v384_v5 = vpop.permute.xlu2 %383 }
  0x6f   : > { %v389_v11 = vsel %vm230_vm0, %v384_v5, 0 }
  0x76   : > { %v359_v16 = vpop.permute.xlu2 %358 }
  0x77   : > { %v364_v19 = vsel %vm230_vm0, %v359_v16, 0 }
  0x7e   : > { %v459_v63 = vpop.permute.xlu2 %458 }
  0x85   : > { %v310_v9 = vpop.permute.xlu1 %309  ;;  %v282_v10 = vpop.permute.xlu0 %281 }
  0x86   : > { %v315_v12 = vsel %vm230_vm0, %v310_v9, 0  ;;  %v287_v13 = vsel %vm230_vm0, %v282_v10, 0 }
  0x87   : > { %324 = vmatpush.bf16.msra.mxu3 %v315_v12  ;;  %296 = vmatpush.bf16.msra.mxu2 %v287_v13 }
  0x8a   : > { %537 = vmatmul.msk.bf16.vlgmr.msra.gmra.mxu2 %vm226_vm1, %v536_v14  ;;  %539 = vmatmul.msk.bf16.vlgmr.msra.gmra.mxu3 %vm226_vm1, %v538_v15 }
  0x8b   : > { %398 = vmatpush.bf16.msrb.mxu2 %v389_v11 }
  0x8d   : > { %v335_v17 = vpop.permute.xlu1 %334  ;;  %v258_v18 = vpop.permute.xlu0 %257 }
  0x8e   : > { %v263_v20 = vsel %vm230_vm0, %v258_v18, 0  ;;  %v340_v21 = vsel %vm230_vm0, %v335_v17, 0 }
  0x8f   : > { %272 = vmatpush.bf16.msra.mxu1 %v263_v20  ;;  %349 = vmatpush.bf16.msrb.mxu0 %v340_v21 }
  0x91   : > { %v243_v32 = vpop.f32.mrf.mxu0 }
  0x92   : > { %535 = vmatmul.msk.bf16.vlgmr.msra.gmra.mxu1 %vm226_vm1, %v534_v22  ;;  %541 = vmatmul.msk.bf16.vlgmr.msrb.gmra.mxu0 %vm226_vm1, %v540_v23  ;;  %v250_v40 = vmul.f32 %v571_v36, %v243_v32 }
  0x93   : > { %373 = vmatpush.bf16.msrb.mxu1 %v364_v19 }
  0x95   : > { %v409_v24 = vpop.permute.xlu0 %408  ;;  %v433_v25 = vpop.permute.xlu1 %432 }
  0x96   : > { %v414_v26 = vsel %vm230_vm0, %v409_v24, 0  ;;  %v438_v27 = vsel %vm230_vm0, %v433_v25, 0 }
  0x97   : > { %423 = vmatpush.bf16.msrb.mxu3 %v414_v26  ;;  %447 = vmatpush.bf16.msra.mxu0 %v438_v27 }
  0x99   : > { %v245_v33 = vpop.f32.mrf.mxu0 }
  0x9a   : > { %545 = vmatmul.msk.bf16.vlgmr.msrb.gmra.mxu2 %vm226_vm1, %v544_v28  ;;  %547 = vmatmul.msk.bf16.vlgmr.msrb.gmra.mxu3 %vm226_vm1, %v546_v29 }
  0x9d   : > { %v466_v3 = vpop.permute.xlu0 %465 }
  0xa2   : > { %543 = vmatmul.msk.bf16.vlgmr.msrb.gmra.mxu1 %vm226_vm1, %v542_v30  ;;  %549 = vmatmul.msk.bf16.vlgmr.msra.gmra.mxu0 %vm226_vm1, %v548_v31 }
 0x10d   : > { %v298_v34 = vpop.f32.mrf.mxu2  ;;  %v326_v35 = vpop.f32.mrf.mxu3 }
 0x10e   : > { %v305_v42 = vmul.f32 %v572_v39, %v298_v34  ;;  %v330_v48 = vmul.f32 %v571_v36, %v326_v35 }
 0x10f   : > { %v274_v37 = vpop.f32.mrf.mxu1  ;;  %v351_v38 = vpop.f32.mrf.mxu0 }
 0x110   : > { %v278_v41 = vadd.f32 %v274_v37, %v250_v40 }
 0x112   : > { %v306_v47 = vadd.f32 %v305_v42, %v278_v41 }
 0x114   : > { %v331_v49 = vadd.f32 %v330_v48, %v306_v47 }
 0x115   : > { %v300_v43 = vpop.f32.mrf.mxu2  ;;  %v328_v44 = vpop.f32.mrf.mxu3 }
 0x116   : > { %v355_v54 = vadd.f32 %v351_v38, %v331_v49 }
 0x117   : > { %v276_v45 = vpop.f32.mrf.mxu1  ;;  %v353_v46 = vpop.f32.mrf.mxu0 }
 0x11d   : > { %v400_v50 = vpop.f32.mrf.mxu2  ;;  %v425_v51 = vpop.f32.mrf.mxu3 }
 0x11e   : > { %v404_v56 = vmul.f32 %v571_v36, %v400_v50 }
 0x11f   : > { %v375_v52 = vpop.f32.mrf.mxu1  ;;  %v449_v53 = vpop.f32.mrf.mxu0 }
 0x120   : > { %v379_v55 = vmul.f32 %v572_v39, %v375_v52  ;;  %v453_v59 = vmul.f32 %v572_v39, %v449_v53 }
 0x122   : > { %v380_v57 = vadd.f32 %v379_v55, %v355_v54 }
 0x124   : > { %v405_v58 = vadd.f32 %v404_v56, %v380_v57 }
 0x125   : > { %v402_v60 = vpop.f32.mrf.mxu2  ;;  %v427_v61 = vpop.f32.mrf.mxu3 }
 0x126   : > { %v429_v62 = vadd.f32 %v425_v51, %v405_v58 }
 0x127   : > { %v377_v0 = vpop.f32.mrf.mxu1  ;;  %v451_v1 = vpop.f32.mrf.mxu0 }
 0x128   : > { %v454_v2 = vadd.f32 %v453_v59, %v429_v62 }
 0x12a   : > { %v461_v4 = vmul.f32 %v459_v63, %v454_v2 }
 0x12c   : > { %v468_v5 = vadd.f32 %v466_v3, %v461_v4 }
 0x12e   : > { %v469_v6 = vmax.f32 %v468_v5, 0.0 }
 0x130   : > { %471 = vst.msk [vmem:[%s219_s13] sm:$0xff] %vm470_vm2, %v469_v6 }
 0x131 PF: > { %s15_s18 = sadd.s32 1, %s579_s18  }
 0x132   : > { %p12_p4 = scmp.ge.s32.totalorder %s15_s18, 4  }
 0x134   :  { %14 = sbr.rel (!%p12_p4) target bundleno = 1 (0x1), region = 79 }

// kernel: backbone_base_forward.5
= control target key start
LH: loop header
LB: loop body
LE: loop exit
PB: predicated region body
PF: predicated region fallthrough
CT: control target
= control target key end

     0   :  { %s622_s18 = smov 0   ;;  %s697_s0 = inlined_call_operand.vmem [shape: bf16[2,4,8,74], index: 0, kind: input, shape index: {}]   ;;  %s698_s1 = inlined_call_operand.vmem [shape: bf16[9,8,8], index: 1, kind: input, shape index: {}]   ;;  %s699_s2 = inlined_call_operand.vmem [shape: f32[8,1], index: 2, kind: input, shape index: {}]   ;;  %s700_s3 = inlined_call_operand.vmem [shape: f32[8,1], index: 3, kind: input, shape index: {}]   ;;  %s701_s4 = inlined_call_operand.vmem [shape: f32[2,1,64], index: 4, kind: input, shape index: {}]   ;;  %s702_s5 = inlined_call_operand.vmem [shape: f32[2,8,64], index: 5, kind: output, shape index: {}]  }
   0x1 LB: > { %s533_s19 = sadd.s32 4294967295, %s586_s18   ;;  %p537_p0 = scmp.ge.s32.totalorder %s586_s18, 1  ;;  %s586_s18 = sphi %s622_s18, %s15_s18  }
   0x2   : > { %p187_p1 = scmp.lt.s32.totalorder %s586_s18, 3 }
   0x4   : > { %p188_p2 = pnand %p537_p0, %p187_p1 }
   0x5   : > { %p214_p3 = scmp.lt.s32.totalorder (!%p188_p2), %s533_s19, 1  ;;  %s588_s26 = smov (!%p188_p2), 127  }
   0x6   : > { %191 = sbr.rel (%p188_p2) target bundleno = 303 (0x12f), region = 40  ;;  %s589_s27 = smov (!%p188_p2), 119  }
   0x7   : > { %s590_s28 = smov (!%p188_p2), 120  }
   0xb   : > { %s704_s19 = smov (!%p214_p3, %s533_s19), 1  ;;  %vm232_vm0 = vcmask 1043456   ;;  %v227_v10 = vld [vmem:[%s698_s1] sm:$0xf]  ;;  %vm228_vm1 = vcmask 64512   ;;  %v591_v21 = vmov 0  }
   0xc   : > { %s563_s20 = sshll.u32 %s704_s19, 4  ;;  %v548_v15 = vld [vmem:[%s698_s1 + $0xc] sm:$0xf]  ;;  %v557_v18 = vld [vmem:[%s698_s1 + $0x1c] sm:$0xf]  ;;  %v463_v19 = vld [vmem:[%s699_s2] sm:$0xff]  ;;  %576 = vset.pattern.permute.xlu1 %v591_v21  ;;  %577 = vset.pattern.permute.xlu2 %v591_v21 }
   0xd   : > { %s218_s23 = scalar_lea.vmem %s697_s0, %s563_s20  ;;  %v470_v20 = vld [vmem:[%s700_s3] sm:$0xff]  ;;  %578 = vset.pattern.permute.xlu0 %v591_v21  ;;  %v545_v26 = vld [vmem:[%s698_s1 + $0x8] sm:$0xf]  ;;  %v551_v27 = vld [vmem:[%s698_s1 + $0x10] sm:$0xf]  ;;  %vm478_vm2 = vcmask 523264  }
   0xe   : > { %v550_v0 = vld [vmem:[%s218_s23 + $0x8] sm:$0xf]  ;;  %v541_v1 = vld [vmem:[%s218_s23 + $0x4] sm:$0xf]  ;;  %v254_v2 = vld [vmem:[%s218_s23] sm:$0xf] }
   0xf   : > { %v339_v3 = vunpack.c.l.b16 %v550_v0  ;;  %v285_v4 = vunpack.c.l.b16 %v541_v1  ;;  %v258_v5 = vunpack.c.l.b16 %v254_v2  ;;  %v234_v6 = vsel %vm232_vm0, %v541_v1, 0  ;;  %v547_v9 = vld [vmem:[%s218_s23 + $0xc] sm:$0xf]  ;;  %v543_v34 = vld [vmem:[%s698_s1 + $0x4] sm:$0xf] }
  0x10   : > { %243 = vmatpush.bf16.msra.mxu0 %v234_v6  ;;  %v366_v12 = vunpack.c.l.b16 %v547_v9  ;;  %v317_v14 = vsel %vm232_vm0, %v547_v9, 0  ;;  %v555_v38 = vld [vmem:[%s698_s1 + $0x18] sm:$0xf]  ;;  %v559_v39 = vld [vmem:[%s698_s1 + $0x20] sm:$0xf] }
  0x11   : > { %v340_v7 = vpack.c.b16 %v339_v3, %v339_v3  ;;  %v286_v8 = vpack.c.b16 %v285_v4, %v285_v4  ;;  %v259_v11 = vpack.c.b16 %v258_v5, %v258_v5  ;;  %326 = vmatpush.bf16.msra.mxu3 %v317_v14  ;;  %v553_v41 = vld [vmem:[%s698_s1 + $0x14] sm:$0xf]  ;;  %v579_v47 = vld [vmem:[%s701_s4] ss:$0 sm:$0xff] }
  0x12   : > { %v367_v13 = vpack.c.b16 %v366_v12, %v366_v12 }
  0x13   : > { %341 = vrot.lane.b32.xlu1 %v340_v7, %s588_s26  ;;  %287 = vrot.lane.b32.xlu0 %v286_v8, %s588_s26 }
  0x14   : > { %417 = vrot.lane.b32.xlu2 %v259_v11, %s589_s27  ;;  %542 = vmatmul.msk.bf16.vlgmr.msra.gmra.mxu0 %vm228_vm1, %v227_v10 }
  0x15   : > { %549 = vmatmul.msk.bf16.vlgmr.msra.gmra.mxu3 %vm228_vm1, %v548_v15 }
  0x1b   : > { %392 = vrot.lane.b32.xlu1 %v286_v8, %s590_s28  ;;  %260 = vrot.lane.b32.xlu0 %v259_v11, %s588_s26  ;;  %s540_s28 = sshll.u32 %s704_s19, 3 }
  0x1c   : > { %368 = vrot.lane.b32.xlu2 %v367_v13, %s588_s26  ;;  %s222_s6 = scalar_lea.vmem %s702_s5, %s540_s28 }
  0x23   : > { %441 = vrot.lane.b32.xlu0 %v286_v8, %s589_s27  ;;  %466 = vperm.xlu1 %576, %v463_v19  }
  0x24   : > { %473 = vperm.xlu2 %577, %v470_v20  }
  0x6e   : > { %v418_v16 = vpop.permute.xlu2 %417 }
  0x6f   : > { %v423_v17 = vsel %vm232_vm0, %v418_v16, 0 }
  0x70   : > { %432 = vmatpush.bf16.msrb.mxu3 %v423_v17 }
  0x73   : > { %558 = vmatmul.msk.bf16.vlgmr.msrb.gmra.mxu3 %vm228_vm1, %v557_v18 }
  0x76   : > { %v369_v28 = vpop.permute.xlu2 %368 }
  0x77   : > { %v374_v31 = vsel %vm232_vm0, %v369_v28, 0 }
  0x7e   : > { %v474_v7 = vpop.permute.xlu2 %473 }
  0x85   : > { %v342_v22 = vpop.permute.xlu1 %341  ;;  %v288_v23 = vpop.permute.xlu0 %287 }
  0x86   : > { %v293_v24 = vsel %vm232_vm0, %v288_v23, 0  ;;  %v347_v25 = vsel %vm232_vm0, %v342_v22, 0 }
  0x87   : > { %302 = vmatpush.bf16.msra.mxu2 %v293_v24  ;;  %356 = vmatpush.bf16.msrb.mxu0 %v347_v25 }
  0x8a   : > { %546 = vmatmul.msk.bf16.vlgmr.msra.gmra.mxu2 %vm228_vm1, %v545_v26  ;;  %552 = vmatmul.msk.bf16.vlgmr.msrb.gmra.mxu0 %vm228_vm1, %v551_v27 }
  0x8d   : > { %v393_v29 = vpop.permute.xlu1 %392  ;;  %v261_v30 = vpop.permute.xlu0 %260 }
  0x8e   : > { %v266_v32 = vsel %vm232_vm0, %v261_v30, 0  ;;  %v398_v33 = vsel %vm232_vm0, %v393_v29, 0 }
  0x8f   : > { %275 = vmatpush.bf16.msra.mxu1 %v266_v32  ;;  %407 = vmatpush.bf16.msrb.mxu2 %v398_v33 }
  0x91   : > { %v245_v35 = vpop.f32.mrf.mxu0 }
  0x92   : > { %544 = vmatmul.msk.bf16.vlgmr.msra.gmra.mxu1 %vm228_vm1, %v543_v34  ;;  %v252_v51 = vmul.f32 %v579_v47, %v245_v35 }
  0x93   : > { %383 = vmatpush.bf16.msrb.mxu1 %v374_v31 }
  0x95   : > { %v442_v36 = vpop.permute.xlu0 %441  ;;  %v467_v4 = vpop.permute.xlu1 %466 }
  0x96   : > { %v447_v37 = vsel %vm232_vm0, %v442_v36, 0 }
  0x97   : > { %456 = vmatpush.bf16.msra.mxu0 %v447_v37 }
  0x98   : > { %v328_v42 = vpop.f32.mrf.mxu3 }
  0x99   : > { %v247_v40 = vpop.f32.mrf.mxu0  ;;  %v332_v54 = vmul.f32 %v579_v47, %v328_v42 }
  0x9a   : > { %556 = vmatmul.msk.bf16.vlgmr.msrb.gmra.mxu2 %vm228_vm1, %v555_v38  ;;  %560 = vmatmul.msk.bf16.vlgmr.msra.gmra.mxu0 %vm228_vm1, %v559_v39 }
  0xa0   : > { %v330_v43 = vpop.f32.mrf.mxu3 }
  0xa2   : > { %554 = vmatmul.msk.bf16.vlgmr.msrb.gmra.mxu1 %vm228_vm1, %v553_v41 }
  0xf6   : > { %v434_v44 = vpop.f32.mrf.mxu3 }
  0xfe   : > { %v436_v45 = vpop.f32.mrf.mxu3 }
 0x107   : > { %v358_v46 = vpop.f32.mrf.mxu0 }
 0x10d   : > { %v304_v48 = vpop.f32.mrf.mxu2 }
 0x10f   : > { %v277_v49 = vpop.f32.mrf.mxu1  ;;  %v360_v50 = vpop.f32.mrf.mxu0 }
 0x110   : > { %v281_v52 = vadd.f32 %v277_v49, %v252_v51 }
 0x112   : > { %v308_v55 = vadd.f32 %v304_v48, %v281_v52 }
 0x114   : > { %v333_v58 = vadd.f32 %v332_v54, %v308_v55 }
 0x115   : > { %v306_v53 = vpop.f32.mrf.mxu2 }
 0x116   : > { %v362_v60 = vadd.f32 %v358_v46, %v333_v58 }
 0x117   : > { %v279_v56 = vpop.f32.mrf.mxu1  ;;  %v458_v57 = vpop.f32.mrf.mxu0 }
 0x11d   : > { %v409_v59 = vpop.f32.mrf.mxu2 }
 0x11e   : > { %v413_v61 = vmul.f32 %v579_v47, %v409_v59 }
 0x11f   : > { %v385_v62 = vpop.f32.mrf.mxu1  ;;  %v460_v63 = vpop.f32.mrf.mxu0 }
 0x120   : > { %v389_v0 = vadd.f32 %v385_v62, %v362_v60 }
 0x122   : > { %v414_v1 = vadd.f32 %v413_v61, %v389_v0 }
 0x124   : > { %v438_v2 = vadd.f32 %v434_v44, %v414_v1 }
 0x125   : > { %v411_v3 = vpop.f32.mrf.mxu2 }
 0x126   : > { %v462_v5 = vadd.f32 %v458_v57, %v438_v2 }
 0x127   : > { %v387_v6 = vpop.f32.mrf.mxu1 }
 0x128   : > { %v469_v8 = vmul.f32 %v467_v4, %v462_v5 }
 0x12a   : > { %v476_v9 = vadd.f32 %v474_v7, %v469_v8 }
 0x12c   : > { %v477_v10 = vmax.f32 %v476_v9, 0.0 }
 0x12e   : > { %479 = vst.msk [vmem:[%s222_s6] sm:$0xff] %vm478_vm2, %v477_v10 }
 0x12f PF: > { %s15_s18 = sadd.s32 1, %s586_s18  }
 0x130   : > { %p12_p4 = scmp.ge.s32.totalorder %s15_s18, 4  }
 0x132   :  { %14 = sbr.rel (!%p12_p4) target bundleno = 1 (0x1), region = 81 }

// kernel: backbone_base_forward.7
= control target key start
LH: loop header
LB: loop body
LE: loop exit
PB: predicated region body
PF: predicated region fallthrough
CT: control target
= control target key end

     0   :  { %s772_s18 = smov 0   ;;  %s856_s0 = inlined_call_operand.vmem [shape: bf16[2,4,8,22], index: 0, kind: input, shape index: {}]   ;;  %s857_s1 = inlined_call_operand.vmem [shape: bf16[9,16,8], index: 1, kind: input, shape index: {}]   ;;  %s858_s2 = inlined_call_operand.vmem [shape: f32[16,1], index: 2, kind: input, shape index: {}]   ;;  %s859_s3 = inlined_call_operand.vmem [shape: f32[16,1], index: 3, kind: input, shape index: {}]   ;;  %s860_s4 = inlined_call_operand.vmem [shape: f32[2,1,16], index: 4, kind: input, shape index: {}]   ;;  %s861_s5 = inlined_call_operand.vmem [shape: f32[2,16,16], index: 5, kind: output, shape index: {}]  }
   0x1 LB: > { %s628_s19 = sadd.s32 4294967295, %s736_s18   ;;  %p632_p0 = scmp.ge.s32.totalorder %s736_s18, 1  ;;  %s736_s18 = sphi %s772_s18, %s15_s18  }
   0x2   : > { %p187_p1 = scmp.lt.s32.totalorder %s736_s18, 3 }
   0x4   : > { %p188_p2 = pnand %p632_p0, %p187_p1 }
   0x5   : > { %p215_p3 = scmp.lt.s32.totalorder (!%p188_p2), %s628_s19, 1  ;;  %s738_s26 = smov (!%p188_p2), 127  }
   0x6   : > { %191 = sbr.rel (%p188_p2) target bundleno = 311 (0x137), region = 40  ;;  %s739_s27 = smov (!%p188_p2), 123  }
   0x7   : > { %s740_s28 = smov (!%p188_p2), 124  }
   0xb   : > { %s863_s19 = smov (!%p215_p3, %s628_s19), 1  ;;  %vm240_vm0 = vcmask 1043456   ;;  %v705_v7 = vld [vmem:[%s857_s1] sm:$0xff]  ;;  %vm236_vm1 = vcmask 64512   ;;  %v708_v15 = vld [vmem:[%s857_s1 + $0x18] sm:$0xff]  ;;  %v741_v21 = vmov 0  }
   0xc   : > { %s703_s20 = sshll.u32 %s863_s19, 4  ;;  %v712_v18 = vld [vmem:[%s857_s1 + $0x38] sm:$0xff]  ;;  %v540_v19 = vld [vmem:[%s858_s2] sm:$0xff]  ;;  %726 = vset.pattern.permute.xlu1 %v741_v21  ;;  %728 = vset.pattern.permute.xlu0 %v741_v21  ;;  %v541_v22 = vld [vmem:[%s858_s2 + $0x8] sm:$0xff]  ;;  %vm570_vm2 = vcmask 130048  }
   0xd   : > { %s219_s23 = scalar_lea.vmem %s856_s0, %s703_s20  ;;  %v554_v20 = vld [vmem:[%s859_s3] sm:$0xff]  ;;  %727 = vset.pattern.permute.xlu2 %v741_v21  ;;  %v707_v27 = vld [vmem:[%s857_s1 + $0x10] sm:$0xff]  ;;  %v555_v29 = vld [vmem:[%s859_s3 + $0x8] sm:$0xff]  ;;  %s224_s10 = scalar_lea.vmem %s861_s5, %s703_s20 }
   0xe   : > { %v665_v0 = vld [vmem:[%s219_s23 + $0x8] sm:$0xf]  ;;  %v637_v1 = vld [vmem:[%s219_s23 + $0x4] sm:$0xf]  ;;  %v265_v2 = vld [vmem:[%s219_s23] sm:$0xf] }
   0xf   : > { %v381_v3 = vunpack.c.l.b16 %v665_v0  ;;  %v310_v4 = vunpack.c.l.b16 %v637_v1  ;;  %v275_v5 = vunpack.c.l.b16 %v265_v2  ;;  %v242_v6 = vsel %vm240_vm0, %v637_v1, 0  ;;  %v657_v10 = vld [vmem:[%s219_s23 + $0xc] sm:$0xf]  ;;  %v709_v28 = vld [vmem:[%s857_s1 + $0x20] sm:$0xff]  ;;  %v711_v39 = vld [vmem:[%s857_s1 + $0x30] sm:$0xff] }
  0x10   : > { %251 = vmatpush.bf16.msra.mxu0 %v242_v6  ;;  %v416_v12 = vunpack.c.l.b16 %v657_v10  ;;  %v350_v14 = vsel %vm240_vm0, %v657_v10, 0  ;;  %v706_v36 = vld [vmem:[%s857_s1 + $0x8] sm:$0xff]  ;;  %v713_v40 = vld [vmem:[%s857_s1 + $0x40] sm:$0xff] }
  0x11   : > { %v382_v8 = vpack.c.b16 %v381_v3, %v381_v3  ;;  %v311_v9 = vpack.c.b16 %v310_v4, %v310_v4  ;;  %v276_v11 = vpack.c.b16 %v275_v5, %v275_v5  ;;  %359 = vmatpush.bf16.msra.mxu3 %v350_v14  ;;  %v710_v41 = vld [vmem:[%s857_s1 + $0x28] sm:$0xff]  ;;  %v729_v44 = vld [vmem:[%s860_s4] ss:$0 sm:$0xff] }
  0x12   : > { %v417_v13 = vpack.c.b16 %v416_v12, %v416_v12 }
  0x13   : > { %383 = vrot.lane.b32.xlu1 %v382_v8, %s738_s26  ;;  %312 = vrot.lane.b32.xlu0 %v311_v9, %s738_s26 }
  0x14   : > { %484 = vrot.lane.b32.xlu2 %v276_v11, %s739_s27  ;;  %642 = vmatmul.msk.bf16.vlgmr.msra.gmra.mxu0 %vm236_vm1, %v705_v7 }
  0x15   : > { %664 = vmatmul.msk.bf16.vlgmr.msra.gmra.mxu3 %vm236_vm1, %v708_v15 }
  0x1b   : > { %450 = vrot.lane.b32.xlu1 %v311_v9, %s740_s28  ;;  %277 = vrot.lane.b32.xlu0 %v276_v11, %s738_s26 }
  0x1c   : > { %418 = vrot.lane.b32.xlu2 %v417_v13, %s738_s26 }
  0x23   : > { %516 = vrot.lane.b32.xlu0 %v311_v9, %s739_s27  ;;  %544 = vperm.xlu1 %726, %v540_v19  }
  0x24   : > { %549 = vperm.xlu2 %727, %v541_v22  }
  0x2b   : > { %558 = vperm.xlu0 %728, %v554_v20   ;;  %563 = vperm.xlu1 %726, %v555_v29  }
  0x6e   : > { %v485_v16 = vpop.permute.xlu2 %484 }
  0x6f   : > { %v490_v17 = vsel %vm240_vm0, %v485_v16, 0 }
  0x70   : > { %499 = vmatpush.bf16.msrb.mxu3 %v490_v17 }
  0x73   : > { %693 = vmatmul.msk.bf16.vlgmr.msrb.gmra.mxu3 %vm236_vm1, %v712_v18 }
  0x76   : > { %v419_v30 = vpop.permute.xlu2 %418 }
  0x77   : > { %v424_v33 = vsel %vm240_vm0, %v419_v30, 0 }
  0x85   : > { %v384_v23 = vpop.permute.xlu1 %383  ;;  %v313_v24 = vpop.permute.xlu0 %312 }
  0x86   : > { %v318_v25 = vsel %vm240_vm0, %v313_v24, 0  ;;  %v389_v26 = vsel %vm240_vm0, %v384_v23, 0  ;;  %v550_v23 = vpop.permute.xlu2 %549 }
  0x87   : > { %327 = vmatpush.bf16.msra.mxu2 %v318_v25  ;;  %398 = vmatpush.bf16.msrb.mxu0 %v389_v26 }
  0x8a   : > { %656 = vmatmul.msk.bf16.vlgmr.msra.gmra.mxu2 %vm236_vm1, %v707_v27  ;;  %672 = vmatmul.msk.bf16.vlgmr.msrb.gmra.mxu0 %vm236_vm1, %v709_v28 }
  0x8d   : > { %v451_v31 = vpop.permute.xlu1 %450  ;;  %v278_v32 = vpop.permute.xlu0 %277 }
  0x8e   : > { %v283_v34 = vsel %vm240_vm0, %v278_v32, 0  ;;  %v456_v35 = vsel %vm240_vm0, %v451_v31, 0 }
  0x8f   : > { %292 = vmatpush.bf16.msra.mxu1 %v283_v34  ;;  %465 = vmatpush.bf16.msrb.mxu2 %v456_v35 }
  0x91   : > { %v253_v42 = vpop.f32.mrf.mxu0 }
  0x92   : > { %649 = vmatmul.msk.bf16.vlgmr.msra.gmra.mxu1 %vm236_vm1, %v706_v36  ;;  %v261_v49 = vmul.f32 %v729_v44, %v253_v42 }
  0x93   : > { %433 = vmatpush.bf16.msrb.mxu1 %v424_v33 }
  0x95   : > { %v517_v37 = vpop.permute.xlu0 %516  ;;  %v545_v11 = vpop.permute.xlu1 %544 }
  0x96   : > { %v522_v38 = vsel %vm240_vm0, %v517_v37, 0 }
  0x97   : > { %531 = vmatpush.bf16.msra.mxu0 %v522_v38 }
  0x98   : > { %v361_v46 = vpop.f32.mrf.mxu3 }
  0x99   : > { %v255_v43 = vpop.f32.mrf.mxu0  ;;  %v366_v52 = vmul.f32 %v729_v44, %v361_v46 }
  0x9a   : > { %686 = vmatmul.msk.bf16.vlgmr.msrb.gmra.mxu2 %vm236_vm1, %v711_v39  ;;  %700 = vmatmul.msk.bf16.vlgmr.msra.gmra.mxu0 %vm236_vm1, %v713_v40  ;;  %v262_v56 = vmul.f32 %v729_v44, %v255_v43 }
  0x9d   : > { %v559_v13 = vpop.permute.xlu0 %558  ;;  %v564_v26 = vpop.permute.xlu1 %563 }
  0xa0   : > { %v363_v54 = vpop.f32.mrf.mxu3 }
  0xa1   : > { %v367_v1 = vmul.f32 %v729_v44, %v363_v54 }
  0xa2   : > { %679 = vmatmul.msk.bf16.vlgmr.msrb.gmra.mxu1 %vm236_vm1, %v710_v41 }
  0xf6   : > { %v501_v3 = vpop.f32.mrf.mxu3 }
  0xfe   : > { %v503_v19 = vpop.f32.mrf.mxu3 }
 0x107   : > { %v400_v48 = vpop.f32.mrf.mxu0 }
 0x10d   : > { %v329_v45 = vpop.f32.mrf.mxu2 }
 0x10f   : > { %v294_v47 = vpop.f32.mrf.mxu1  ;;  %v402_v57 = vpop.f32.mrf.mxu0 }
 0x110   : > { %v299_v50 = vadd.f32 %v294_v47, %v261_v49 }
 0x112   : > { %v334_v53 = vadd.f32 %v329_v45, %v299_v50 }
 0x114   : > { %v368_v58 = vadd.f32 %v366_v52, %v334_v53 }
 0x115   : > { %v331_v51 = vpop.f32.mrf.mxu2 }
 0x116   : > { %v405_v61 = vadd.f32 %v400_v48, %v368_v58 }
 0x117   : > { %v296_v55 = vpop.f32.mrf.mxu1  ;;  %v533_v6 = vpop.f32.mrf.mxu0 }
 0x118   : > { %v300_v59 = vadd.f32 %v296_v55, %v262_v56 }
 0x11a   : > { %v335_v62 = vadd.f32 %v331_v51, %v300_v59 }
 0x11c   : > { %v369_v4 = vadd.f32 %v367_v1, %v335_v62 }
 0x11d   : > { %v467_v60 = vpop.f32.mrf.mxu2 }
 0x11e   : > { %v472_v63 = vmul.f32 %v729_v44, %v467_v60  ;;  %v406_v9 = vadd.f32 %v402_v57, %v369_v4 }
 0x11f   : > { %v435_v0 = vpop.f32.mrf.mxu1  ;;  %v535_v22 = vpop.f32.mrf.mxu0 }
 0x120   : > { %v440_v2 = vadd.f32 %v435_v0, %v405_v61 }
 0x122   : > { %v474_v5 = vadd.f32 %v472_v63, %v440_v2 }
 0x124   : > { %v506_v7 = vadd.f32 %v501_v3, %v474_v5 }
 0x125   : > { %v469_v8 = vpop.f32.mrf.mxu2 }
 0x126   : > { %v538_v10 = vadd.f32 %v533_v6, %v506_v7  ;;  %v473_v15 = vmul.f32 %v729_v44, %v469_v8 }
 0x127   : > { %v437_v12 = vpop.f32.mrf.mxu1 }
 0x128   : > { %v552_v14 = vmul.f32 %v545_v11, %v538_v10  ;;  %v441_v16 = vadd.f32 %v437_v12, %v406_v9 }
 0x12a   : > { %v475_v17 = vadd.f32 %v473_v15, %v441_v16  ;;  %v566_v18 = vadd.f32 %v559_v13, %v552_v14 }
 0x12c   : > { %v507_v20 = vadd.f32 %v503_v19, %v475_v17  ;;  %v568_v21 = vmax.f32 %v566_v18, 0.0 }
 0x12e   : > { %v539_v24 = vadd.f32 %v535_v22, %v507_v20  ;;  %571 = vst.msk [vmem:[%s224_s10] sm:$0xff] %vm570_vm2, %v568_v21 }
 0x130   : > { %v553_v25 = vmul.f32 %v550_v23, %v539_v24 }
 0x132   : > { %v567_v27 = vadd.f32 %v564_v26, %v553_v25 }
 0x134   : > { %v569_v28 = vmax.f32 %v567_v27, 0.0 }
 0x136   : > { %572 = vst.msk [vmem:[%s224_s10 + $0x8] sm:$0xff] %vm570_vm2, %v569_v28 }
 0x137 PF: > { %s15_s18 = sadd.s32 1, %s736_s18  }
 0x138   : > { %p12_p4 = scmp.ge.s32.totalorder %s15_s18, 4  }
 0x13a   :  { %14 = sbr.rel (!%p12_p4) target bundleno = 1 (0x1), region = 81 }

// kernel: backbone_base_forward.8
= control target key start
LH: loop header
LB: loop body
LE: loop exit
PB: predicated region body
PF: predicated region fallthrough
CT: control target
= control target key end

     0   :  { %s1050_s18 = smov 0   ;;  %s1200_s0 = inlined_call_operand.vmem [shape: bf16[2,4,16,8], index: 0, kind: input, shape index: {}]   ;;  %s1201_s1 = inlined_call_operand.vmem [shape: bf16[9,32,16], index: 1, kind: input, shape index: {}]   ;;  %s1202_s2 = inlined_call_operand.vmem [shape: f32[32,1], index: 2, kind: input, shape index: {}]   ;;  %s1203_s3 = inlined_call_operand.vmem [shape: f32[32,1], index: 3, kind: input, shape index: {}]   ;;  %s1204_s4 = inlined_call_operand.vmem [shape: f32[2,1,4], index: 4, kind: input, shape index: {}]   ;;  %s1205_s5 = inlined_call_operand.vmem [shape: f32[2,32,4], index: 5, kind: output, shape index: {}]  }
   0x1 LB: > { %s812_s19 = sadd.s32 4294967295, %s1014_s18   ;;  %p816_p0 = scmp.ge.s32.totalorder %s1014_s18, 1  ;;  %s1014_s18 = sphi %s1050_s18, %s15_s18  }
   0x2   : > { %p187_p1 = scmp.lt.s32.totalorder %s1014_s18, 3 }
   0x4   : > { %p188_p2 = pnand %p816_p0, %p187_p1 }
   0x5   : > { %p215_p3 = scmp.lt.s32.totalorder (!%p188_p2), %s812_s19, 1  ;;  %s1016_s24 = smov (!%p188_p2), 127  }
   0x6   : > { %191 = sbr.rel (%p188_p2) target bundleno = 338 (0x152), region = 40  ;;  %s1017_s27 = smov (!%p188_p2), 125  }
   0x7   : > { %s1018_s28 = smov (!%p188_p2), 126  }
   0xb   : > { %s1207_s19 = smov (!%p215_p3, %s812_s19), 1  ;;  %v971_v4 = vld [vmem:[%s1201_s1 + $0x8] sm:$0xff]  ;;  %vm250_vm0 = vcmask 130048   ;;  %v970_v5 = vld [vmem:[%s1201_s1] sm:$0xff]  ;;  %v978_v6 = vld [vmem:[%s1201_s1 + $0x30] sm:$0xff]  ;;  %v1019_v23 = vmov 0  }
   0xc   : > { %s967_s20 = sshll.u32 %s1207_s19, 5  ;;  %v979_v8 = vld [vmem:[%s1201_s1 + $0x38] sm:$0xff]  ;;  %v975_v10 = vld [vmem:[%s1201_s1 + $0x20] sm:$0xff]  ;;  %v987_v13 = vld [vmem:[%s1201_s1 + $0x70] sm:$0xff]  ;;  %1004 = vset.pattern.permute.xlu1 %v1019_v23  ;;  %1006 = vset.pattern.permute.xlu0 %v1019_v23  ;;  %vm752_vm1 = vcmask 31744  }
   0xd   : > { %s219_s23 = scalar_lea.vmem %s1200_s0, %s967_s20  ;;  %v981_v12 = vld [vmem:[%s1201_s1 + $0x40] sm:$0xff]  ;;  %v973_v16 = vld [vmem:[%s1201_s1 + $0x10] sm:$0xff]  ;;  %v976_v18 = vld [vmem:[%s1201_s1 + $0x28] sm:$0xff]  ;;  %1005 = vset.pattern.permute.xlu2 %v1019_v23  ;;  %s1183_s14 = scalar_lea.vmem %s1205_s5, %s967_s20 }
   0xe   : > { %v969_v0 = vld [vmem:[%s219_s23 + $0x8] sm:$0xff]  ;;  %v980_v1 = vld [vmem:[%s219_s23 + $0x10] sm:$0xff]  ;;  %v972_v2 = vld [vmem:[%s219_s23] sm:$0xff] }
   0xf   : > { %356 = vrot.lane.b32.xlu0 %v969_v0, %s1016_s24  ;;  %468 = vrot.lane.b32.xlu1 %v980_v1, %s1016_s24  ;;  %v977_v3 = vld [vmem:[%s219_s23 + $0x18] sm:$0xff]  ;;  %v982_v20 = vld [vmem:[%s1201_s1 + $0x48] sm:$0xff] }
  0x10   : > { %613 = vrot.lane.b32.xlu2 %v972_v2, %s1017_s27  ;;  %991 = vmatpush.bf16.msra.mxu1 %v969_v0  ;;  %v988_v21 = vld [vmem:[%s1201_s1 + $0x78] sm:$0xff]  ;;  %v692_v22 = vld [vmem:[%s1202_s2] sm:$0xff]  ;;  %v694_v26 = vld [vmem:[%s1202_s2 + $0x10] sm:$0xff] }
  0x11   : > { %264 = vmatpush.bf16.msra.mxu0 %v969_v0  ;;  %425 = vmatpush.bf16.msra.mxu3 %v977_v3  ;;  %v974_v24 = vld [vmem:[%s1201_s1 + $0x18] sm:$0xff]  ;;  %v693_v27 = vld [vmem:[%s1202_s2 + $0x8] sm:$0xff]  ;;  %v985_v28 = vld [vmem:[%s1201_s1 + $0x60] sm:$0xff] }
  0x12   : > { %v695_v25 = vld [vmem:[%s1202_s2 + $0x18] sm:$0xff]  ;;  %v989_v29 = vld [vmem:[%s1201_s1 + $0x80] sm:$0xff]  ;;  %v721_v31 = vld [vmem:[%s1203_s3 + $0x8] sm:$0xff] }
  0x13   : > { %836 = vmatmul.msk.bf16.vlgmr.msra.gmra.mxu1 %vm250_vm0, %v971_v4  ;;  %v723_v30 = vld [vmem:[%s1203_s3 + $0x18] sm:$0xff]  ;;  %v720_v32 = vld [vmem:[%s1203_s3] sm:$0xff]  ;;  %v983_v33 = vld [vmem:[%s1201_s1 + $0x50] sm:$0xff] }
  0x14   : > { %835 = vmatmul.msk.bf16.vlgmr.msra.gmra.mxu0 %vm250_vm0, %v970_v5  ;;  %887 = vmatmul.msk.bf16.vlgmr.msra.gmra.mxu3 %vm250_vm0, %v978_v6  ;;  %v722_v34 = vld [vmem:[%s1203_s3 + $0x10] sm:$0xff]  ;;  %v986_v35 = vld [vmem:[%s1201_s1 + $0x68] sm:$0xff]  ;;  %v984_v37 = vld [vmem:[%s1201_s1 + $0x58] sm:$0xff] }
  0x15   : > { %v990_v36 = vld [vmem:[%s1201_s1 + $0x88] sm:$0xff]  ;;  %v1165_v53 = vld [vmem:[%s1204_s4] ss:$0 sm:$0xff] }
  0x17   : > { %309 = vrot.lane.b32.xlu0 %v972_v2, %s1016_s24  ;;  %562 = vrot.lane.b32.xlu1 %v969_v0, %s1018_s28 }
  0x18   : > { %515 = vrot.lane.b32.xlu2 %v977_v3, %s1016_s24 }
  0x1f   : > { %660 = vrot.lane.b32.xlu0 %v969_v0, %s1017_s27  ;;  %698 = vperm.xlu1 %1004, %v692_v22  }
  0x20   : > { %703 = vperm.xlu2 %1005, %v693_v27  }
  0x24   : > { %888 = vmatmul.msk.bf16.gmra.mxu3 %vm250_vm0, %v979_v8 }
  0x27   : > { %708 = vperm.xlu0 %1006, %v694_v26   ;;  %713 = vperm.xlu1 %1004, %v695_v25  }
  0x28   : > { %726 = vperm.xlu2 %1005, %v720_v32  }
  0x2f   : > { %741 = vperm.xlu0 %1006, %v723_v30   ;;  %731 = vperm.xlu1 %1004, %v721_v31  }
  0x30   : > { %736 = vperm.xlu2 %1005, %v722_v34  }
  0x6a   : > { %v614_v7 = vpop.permute.xlu2 %613 }
  0x6b   : > { %629 = vmatpush.bf16.msrb.mxu3 %v614_v7 }
  0x6e   : > { %949 = vmatmul.msk.bf16.vlgmr.msrb.gmra.mxu3 %vm250_vm0, %v987_v13 }
  0x72   : > { %v516_v14 = vpop.permute.xlu2 %515 }
  0x7a   : > { %v704_v5 = vpop.permute.xlu2 %703 }
  0x7e   : > { %950 = vmatmul.msk.bf16.gmra.mxu3 %vm250_vm0, %v988_v21 }
  0x81   : > { %v357_v9 = vpop.permute.xlu0 %356  ;;  %v469_v11 = vpop.permute.xlu1 %468 }
  0x82   : > { %372 = vmatpush.bf16.msra.mxu2 %v357_v9  ;;  %484 = vmatpush.bf16.msrb.mxu0 %v469_v11  ;;  %v727_v26 = vpop.permute.xlu2 %726 }
  0x85   : > { %867 = vmatmul.msk.bf16.vlgmr.msra.gmra.mxu2 %vm250_vm0, %v975_v10  ;;  %907 = vmatmul.msk.bf16.vlgmr.msrb.gmra.mxu0 %vm250_vm0, %v981_v12 }
  0x89   : > { %v310_v15 = vpop.permute.xlu0 %309  ;;  %v563_v17 = vpop.permute.xlu1 %562 }
  0x8a   : > { %325 = vmatpush.bf16.msrb.mxu1 %v310_v15  ;;  %578 = vmatpush.bf16.msrb.mxu2 %v563_v17 }
  0x8d   : > { %853 = vmatmul.msk.bf16.vlgmr.msrb.gmra.mxu1 %vm250_vm0, %v973_v16 }
  0x8e   : > { %531 = vmatpush.bf16.msra.mxu1 %v516_v14 }
  0x90   : > { %v271_v39 = vpop.f32.mrf.mxu1 }
  0x91   : > { %v661_v19 = vpop.permute.xlu0 %660  ;;  %v266_v38 = vpop.f32.mrf.mxu0  ;;  %v281_v11 = vmul.f32 %v1165_v53, %v271_v39 }
  0x92   : > { %676 = vmatpush.bf16.msra.mxu0 %v661_v19  ;;  %v279_v55 = vmul.f32 %v1165_v53, %v266_v38  ;;  %v699_v2 = vpop.permute.xlu1 %698 }
  0x95   : > { %868 = vmatmul.msk.bf16.gmra.mxu2 %vm250_vm0, %v976_v18  ;;  %908 = vmatmul.msk.bf16.gmra.mxu0 %vm250_vm0, %v982_v20 }
  0x97   : > { %v427_v41 = vpop.f32.mrf.mxu3 }
  0x98   : > { %v273_v42 = vpop.f32.mrf.mxu1  ;;  %v437_v61 = vmul.f32 %v1165_v53, %v427_v41 }
  0x99   : > { %v268_v40 = vpop.f32.mrf.mxu0  ;;  %v282_v27 = vmul.f32 %v1165_v53, %v273_v42 }
  0x9a   : > { %v280_v63 = vmul.f32 %v1165_v53, %v268_v40  ;;  %v714_v19 = vpop.permute.xlu1 %713 }
  0x9d   : > { %854 = vmatmul.msk.bf16.gmra.mxu1 %vm250_vm0, %v974_v24 }
  0x9f   : > { %v429_v45 = vpop.f32.mrf.mxu3 }
  0xa0   : > { %v438_v12 = vmul.f32 %v1165_v53, %v429_v45 }
  0xa5   : > { %935 = vmatmul.msk.bf16.vlgmr.msrb.gmra.mxu2 %vm250_vm0, %v985_v28  ;;  %963 = vmatmul.msk.bf16.vlgmr.msra.gmra.mxu0 %vm250_vm0, %v989_v29 }
  0xa7   : > { %v432_v50 = vpop.f32.mrf.mxu3 }
  0xa8   : > { %v439_v22 = vmul.f32 %v1165_v53, %v432_v50 }
  0xad   : > { %921 = vmatmul.msk.bf16.vlgmr.msra.gmra.mxu1 %vm250_vm0, %v983_v33 }
  0xaf   : > { %v434_v57 = vpop.f32.mrf.mxu3 }
  0xb0   : > { %v440_v45 = vmul.f32 %v1165_v53, %v434_v57 }
  0xb5   : > { %936 = vmatmul.msk.bf16.gmra.mxu2 %vm250_vm0, %v986_v35  ;;  %964 = vmatmul.msk.bf16.gmra.mxu0 %vm250_vm0, %v990_v36 }
  0xbd   : > { %922 = vmatmul.msk.bf16.gmra.mxu1 %vm250_vm0, %v984_v37 }
  0xf1   : > { %v631_v3 = vpop.f32.mrf.mxu3 }
  0xf9   : > { %v633_v24 = vpop.f32.mrf.mxu3 }
 0x102   : > { %v486_v43 = vpop.f32.mrf.mxu0 }
 0x108   : > { %v374_v44 = vpop.f32.mrf.mxu2 }
 0x10a   : > { %v327_v46 = vpop.f32.mrf.mxu1  ;;  %v488_v47 = vpop.f32.mrf.mxu0 }
 0x10b   : > { %v337_v56 = vadd.f32 %v327_v46, %v279_v55 }
 0x10d   : > { %v384_v60 = vadd.f32 %v374_v44, %v337_v56  ;;  %v732_v44 = vpop.permute.xlu1 %731 }
 0x10f   : > { %v441_v0 = vadd.f32 %v437_v61, %v384_v60  ;;  %v709_v61 = vpop.permute.xlu0 %708 }
 0x110   : > { %v376_v48 = vpop.f32.mrf.mxu2 }
 0x111   : > { %v496_v6 = vadd.f32 %v486_v43, %v441_v0 }
 0x112   : > { %v329_v49 = vpop.f32.mrf.mxu1  ;;  %v491_v51 = vpop.f32.mrf.mxu0 }
 0x113   : > { %v338_v1 = vadd.f32 %v329_v49, %v280_v63 }
 0x115   : > { %v385_v7 = vadd.f32 %v376_v48, %v338_v1  ;;  %v636_v48 = vpop.f32.mrf.mxu3  ;;  %v737_v1 = vpop.permute.xlu2 %736 }
 0x117   : > { %v442_v14 = vadd.f32 %v438_v12, %v385_v7 }
 0x118   : > { %v379_v52 = vpop.f32.mrf.mxu2 }
 0x119   : > { %v497_v20 = vadd.f32 %v488_v47, %v442_v14 }
 0x11a   : > { %v332_v54 = vpop.f32.mrf.mxu1  ;;  %v1168_v59 = vpop.f32.mrf.mxu0 }
 0x11b   : > { %v339_v15 = vadd.f32 %v332_v54, %v281_v11 }
 0x11d   : > { %v386_v21 = vadd.f32 %v379_v52, %v339_v15 }
 0x11f   : > { %v443_v32 = vadd.f32 %v439_v22, %v386_v21 }
 0x120   : > { %v381_v58 = vpop.f32.mrf.mxu2 }
 0x121   : > { %v498_v39 = vadd.f32 %v491_v51, %v443_v32 }
 0x122   : > { %v334_v62 = vpop.f32.mrf.mxu1  ;;  %v678_v10 = vpop.f32.mrf.mxu0 }
 0x123   : > { %v340_v33 = vadd.f32 %v334_v62, %v282_v27 }
 0x125   : > { %v387_v40 = vadd.f32 %v381_v58, %v340_v33 }
 0x127   : > { %v444_v49 = vadd.f32 %v440_v45, %v387_v40 }
 0x128   : > { %v580_v4 = vpop.f32.mrf.mxu2 }
 0x129   : > { %v590_v8 = vmul.f32 %v1165_v53, %v580_v4  ;;  %v499_v58 = vadd.f32 %v1168_v59, %v444_v49  ;;  %v638_v4 = vpop.f32.mrf.mxu3 }
 0x12a   : > { %v533_v9 = vpop.f32.mrf.mxu1  ;;  %v680_v31 = vpop.f32.mrf.mxu0 }
 0x12b   : > { %v543_v13 = vadd.f32 %v533_v9, %v496_v6  ;;  %v742_v9 = vpop.permute.xlu0 %741 }
 0x12d   : > { %v594_v16 = vadd.f32 %v590_v8, %v543_v13 }
 0x12f   : > { %v641_v17 = vadd.f32 %v631_v3, %v594_v16 }
 0x130   : > { %v582_v18 = vpop.f32.mrf.mxu2 }
 0x131   : > { %v688_v23 = vadd.f32 %v678_v10, %v641_v17  ;;  %v591_v29 = vmul.f32 %v1165_v53, %v582_v18 }
 0x132   : > { %v535_v25 = vpop.f32.mrf.mxu1  ;;  %v683_v54 = vpop.f32.mrf.mxu0 }
 0x133   : > { %v544_v28 = vadd.f32 %v535_v25, %v497_v20  ;;  %v716_v30 = vmul.f32 %v699_v2, %v688_v23 }
 0x135   : > { %v744_v34 = vadd.f32 %v727_v26, %v716_v30  ;;  %v595_v35 = vadd.f32 %v591_v29, %v544_v28 }
 0x137   : > { %v748_v36 = vmax.f32 %v744_v34, 0.0  ;;  %v642_v37 = vadd.f32 %v633_v24, %v595_v35 }
 0x138   : > { %v585_v38 = vpop.f32.mrf.mxu2 }
 0x139   : > { %753 = vst.msk [vmem:[%s1183_s14] sm:$0xff] %vm752_vm1, %v748_v36  ;;  %v689_v41 = vadd.f32 %v680_v31, %v642_v37  ;;  %v592_v42 = vmul.f32 %v1165_v53, %v585_v38 }
 0x13a   : > { %v538_v43 = vpop.f32.mrf.mxu1  ;;  %v685_v7 = vpop.f32.mrf.mxu0 }
 0x13b   : > { %v545_v46 = vadd.f32 %v538_v43, %v498_v39  ;;  %v717_v47 = vmul.f32 %v704_v5, %v689_v41 }
 0x13d   : > { %v745_v50 = vadd.f32 %v732_v44, %v717_v47  ;;  %v596_v52 = vadd.f32 %v592_v42, %v545_v46 }
 0x13f   : > { %v749_v55 = vmax.f32 %v745_v50, 0.0  ;;  %v643_v51 = vadd.f32 %v636_v48, %v596_v52 }
 0x140   : > { %v587_v56 = vpop.f32.mrf.mxu2 }
 0x141   : > { %754 = vst.msk [vmem:[%s1183_s14 + $0x8] sm:$0xff] %vm752_vm1, %v749_v55  ;;  %v690_v60 = vadd.f32 %v683_v54, %v643_v51  ;;  %v593_v57 = vmul.f32 %v1165_v53, %v587_v56 }
 0x142   : > { %v540_v62 = vpop.f32.mrf.mxu1 }
 0x143   : > { %v718_v63 = vmul.f32 %v709_v61, %v690_v60  ;;  %v546_v0 = vadd.f32 %v540_v62, %v499_v58 }
 0x145   : > { %v746_v2 = vadd.f32 %v737_v1, %v718_v63  ;;  %v597_v3 = vadd.f32 %v593_v57, %v546_v0 }
 0x147   : > { %v750_v5 = vmax.f32 %v746_v2, 0.0  ;;  %v644_v6 = vadd.f32 %v638_v4, %v597_v3 }
 0x149   : > { %755 = vst.msk [vmem:[%s1183_s14 + $0x10] sm:$0xff] %vm752_vm1, %v750_v5  ;;  %v691_v59 = vadd.f32 %v685_v7, %v644_v6 }
 0x14b   : > { %v719_v8 = vmul.f32 %v714_v19, %v691_v59 }
 0x14d   : > { %v747_v10 = vadd.f32 %v742_v9, %v719_v8 }
 0x14f   : > { %v751_v11 = vmax.f32 %v747_v10, 0.0 }
 0x151   : > { %756 = vst.msk [vmem:[%s1183_s14 + $0x18] sm:$0xff] %vm752_vm1, %v751_v11 }
 0x152 PF: > { %s15_s18 = sadd.s32 1, %s1014_s18  }
 0x153   : > { %p12_p4 = scmp.ge.s32.totalorder %s15_s18, 4  }
 0x155   :  { %14 = sbr.rel (!%p12_p4) target bundleno = 1 (0x1), region = 81 }

// kernel: backbone_base_forward.9
= control target key start
LH: loop header
LB: loop body
LE: loop exit
PB: predicated region body
PF: predicated region fallthrough
CT: control target
= control target key end

     0   :  { %s1561_s18 = smov 0   ;;  %s1907_s0 = inlined_call_operand.vmem [shape: bf16[2,4,32,4], index: 0, kind: input, shape index: {}]   ;;  %s1908_s1 = inlined_call_operand.vmem [shape: bf16[9,64,32], index: 1, kind: input, shape index: {}]   ;;  %s1909_s2 = inlined_call_operand.vmem [shape: f32[64,1], index: 2, kind: input, shape index: {}]   ;;  %s1910_s3 = inlined_call_operand.vmem [shape: f32[64,1], index: 3, kind: input, shape index: {}]   ;;  %s1911_s4 = inlined_call_operand.vmem [shape: f32[2,1,1], index: 4, kind: input, shape index: {}]   ;;  %s1912_s5 = inlined_call_operand.vmem [shape: f32[2,64,1], index: 5, kind: output, shape index: {}]  }
   0x1 LB: > { %s1159_s19 = sadd.s32 4294967295, %s1527_s18   ;;  %p1163_p0 = scmp.ge.s32.totalorder %s1527_s18, 1  ;;  %s1527_s18 = sphi %s1561_s18, %s15_s18  }
   0x2   : > { %p187_p1 = scmp.lt.s32.totalorder %s1527_s18, 3 }
   0x4   : > { %p188_p2 = pnand %p1163_p0, %p187_p1 }
   0x5   : > { %p215_p3 = scmp.lt.s32.totalorder (!%p188_p2), %s1159_s19, 1  ;;  %s1529_s24 = smov (!%p188_p2), 127  }
   0x6   : > { %191 = sbr.rel (%p188_p2) target bundleno = 408 (0x198), region = 40  ;;  %s1530_s6 = smov (!%p188_p2), 126  }
   0xb   : > { %s1914_s19 = smov (!%p215_p3, %s1159_s19), 1  ;;  %v1464_v7 = vld [vmem:[%s1908_s1 + $0x10] sm:$0xff]  ;;  %vm272_vm0 = vcmask 261120   ;;  %v1463_v8 = vld [vmem:[%s1908_s1 + $0x8] sm:$0xff]  ;;  %v1465_v9 = vld [vmem:[%s1908_s1 + $0x18] sm:$0xff]  ;;  %vm1095_vm1 = vcmask 7168  }
   0xc   : > { %s1458_s20 = sshll.u32 %s1914_s19, 6  ;;  %v1462_v11 = vld [vmem:[%s1908_s1] sm:$0xff]  ;;  %v1479_v16 = vld [vmem:[%s1908_s1 + $0x68] sm:$0xff]  ;;  %v1480_v20 = vld [vmem:[%s1908_s1 + $0x70] sm:$0xff] }
   0xd   : > { %s219_s23 = scalar_lea.vmem %s1907_s0, %s1458_s20  ;;  %v1478_v12 = vld [vmem:[%s1908_s1 + $0x60] sm:$0xff]  ;;  %v1485_v19 = vld [vmem:[%s1908_s1 + $0x88] sm:$0xff]  ;;  %v1486_v28 = vld [vmem:[%s1908_s1 + $0x90] sm:$0xff]  ;;  %s1805_s15 = scalar_lea.vmem %s1912_s5, %s1458_s20 }
   0xe   : > { %v1467_v0 = vld [vmem:[%s219_s23 + $0x8] sm:$0xff]  ;;  %v1461_v1 = vld [vmem:[%s219_s23 + $0x18] sm:$0xff]  ;;  %v1460_v3 = vld [vmem:[%s219_s23 + $0x10] sm:$0xff] }
   0xf   : > { %v1483_v2 = vld [vmem:[%s219_s23 + $0x28] sm:$0xff]  ;;  %378 = vrot.lane.b32.xlu1 %v1467_v0, %s1529_s24  ;;  %462 = vrot.lane.b32.xlu0 %v1461_v1, %s1529_s24  ;;  %v1466_v4 = vld [vmem:[%s219_s23] sm:$0xff] }
  0x10   : > { %664 = vrot.lane.b32.xlu2 %v1483_v2, %s1529_s24  ;;  %1505 = vmatpush.bf16.msra.mxu2 %v1461_v1  ;;  %v1477_v5 = vld [vmem:[%s219_s23 + $0x38] sm:$0xff]  ;;  %v1482_v6 = vld [vmem:[%s219_s23 + $0x20] sm:$0xff]  ;;  %v1476_v10 = vld [vmem:[%s219_s23 + $0x30] sm:$0xff] }
  0x11   : > { %1504 = vmatpush.bf16.msra.mxu1 %v1461_v1  ;;  %1506 = vmatpush.bf16.msra.mxu3 %v1461_v1  ;;  %v1484_v15 = vld [vmem:[%s1908_s1 + $0x80] sm:$0xff]  ;;  %v1481_v29 = vld [vmem:[%s1908_s1 + $0x78] sm:$0xff]  ;;  %v1469_v31 = vld [vmem:[%s1908_s1 + $0x28] sm:$0xff] }
  0x12   : > { %291 = vmatpush.bf16.msra.mxu0 %v1461_v1  ;;  %v1468_v23 = vld [vmem:[%s1908_s1 + $0x20] sm:$0xff]  ;;  %v1473_v32 = vld [vmem:[%s1908_s1 + $0x48] sm:$0xff]  ;;  %v1487_v35 = vld [vmem:[%s1908_s1 + $0x98] sm:$0xff] }
  0x13   : > { %v1472_v24 = vld [vmem:[%s1908_s1 + $0x40] sm:$0xff]  ;;  %v1470_v37 = vld [vmem:[%s1908_s1 + $0x30] sm:$0xff]  ;;  %v1497_v40 = vld [vmem:[%s1908_s1 + $0xe8] sm:$0xff] }
  0x14   : > { %1508 = vmatpush.bf16.msra.mxu2 %v1460_v3  ;;  %v1496_v36 = vld [vmem:[%s1908_s1 + $0xe0] sm:$0xff]  ;;  %v1474_v38 = vld [vmem:[%s1908_s1 + $0x50] sm:$0xff]  ;;  %v1471_v41 = vld [vmem:[%s1908_s1 + $0x38] sm:$0xff] }
  0x15   : > { %1507 = vmatpush.bf16.msra.mxu1 %v1460_v3  ;;  %1509 = vmatpush.bf16.msra.mxu3 %v1460_v3  ;;  %v1500_v39 = vld [vmem:[%s1908_s1 + $0x100] sm:$0xff]  ;;  %v1475_v42 = vld [vmem:[%s1908_s1 + $0x58] sm:$0xff]  ;;  %v1501_v43 = vld [vmem:[%s1908_s1 + $0x108] sm:$0xff] }
  0x16   : > { %292 = vmatpush.bf16.msra.mxu0 %v1460_v3  ;;  %v1498_v44 = vld [vmem:[%s1908_s1 + $0xf0] sm:$0xff]  ;;  %v1488_v45 = vld [vmem:[%s1908_s1 + $0xa0] sm:$0xff]  ;;  %v1499_v48 = vld [vmem:[%s1908_s1 + $0xf8] sm:$0xff] }
  0x17   : > { %376 = vrot.lane.b32.xlu1 %v1466_v4, %s1529_s24  ;;  %460 = vrot.lane.b32.xlu0 %v1460_v3, %s1529_s24  ;;  %v1492_v46 = vld [vmem:[%s1908_s1 + $0xc0] sm:$0xff]  ;;  %v1502_v47 = vld [vmem:[%s1908_s1 + $0x110] sm:$0xff] }
  0x18   : > { %662 = vrot.lane.b32.xlu2 %v1482_v6, %s1529_s24  ;;  %1198 = vmatmul.msk.bf16.vlgmr.msra.gmra.mxu2 %vm272_vm0, %v1464_v7  ;;  %v1489_v49 = vld [vmem:[%s1908_s1 + $0xa8] sm:$0xff]  ;;  %v1503_v52 = vld [vmem:[%s1908_s1 + $0x118] sm:$0xff]  ;;  %v1490_v54 = vld [vmem:[%s1908_s1 + $0xb0] sm:$0xff] }
  0x19   : > { %579 = vmatpush.bf16.msrb.mxu3 %v1477_v5  ;;  %1197 = vmatmul.msk.bf16.vlgmr.msra.gmra.mxu1 %vm272_vm0, %v1463_v8  ;;  %v1493_v50 = vld [vmem:[%s1908_s1 + $0xc8] sm:$0xff]  ;;  %v1494_v55 = vld [vmem:[%s1908_s1 + $0xd0] sm:$0xff]  ;;  %v1491_v61 = vld [vmem:[%s1908_s1 + $0xb8] sm:$0xff] }
  0x1a   : > { %1199 = vmatmul.msk.bf16.vlgmr.msra.gmra.mxu3 %vm272_vm0, %v1465_v9  ;;  %1196 = vmatmul.msk.bf16.vlgmr.msra.gmra.mxu0 %vm272_vm0, %v1462_v11  ;;  %v1495_v62 = vld [vmem:[%s1908_s1 + $0xd8] sm:$0xff] }
  0x1d   : > { %580 = vmatpush.bf16.msrb.mxu3 %v1476_v10 }
  0x1f   : > { %748 = vrot.lane.b32.xlu1 %v1477_v5, %s1529_s24  ;;  %918 = vrot.lane.b32.xlu0 %v1467_v0, %s1530_s6 }
  0x20   : > { %916 = vrot.lane.b32.xlu2 %v1466_v4, %s1530_s6 }
  0x27   : > { %1002 = vrot.lane.b32.xlu1 %v1461_v1, %s1530_s6  ;;  %746 = vrot.lane.b32.xlu0 %v1476_v10, %s1529_s24 }
  0x28   : > { %1000 = vrot.lane.b32.xlu2 %v1460_v3, %s1530_s6 }
  0x2a   : > { %1300 = vmatmul.msk.bf16.vlgmr.msrb.gmra.mxu3 %vm272_vm0, %v1478_v12 }
  0x3a   : > { %1301 = vmatmul.msk.bf16.gmra.mxu3 %vm272_vm0, %v1479_v16 }
  0x4a   : > { %1302 = vmatmul.msk.bf16.gmra.mxu3 %vm272_vm0, %v1480_v20 }
  0x5a   : > { %1303 = vmatmul.msk.bf16.gmra.mxu3 %vm272_vm0, %v1481_v29 }
  0x6a   : > { %v665_v13 = vpop.permute.xlu2 %664 }
  0x6b   : > { %686 = vmatpush.bf16.msrb.mxu0 %v665_v13 }
  0x72   : > { %v663_v14 = vpop.permute.xlu2 %662 }
  0x73   : > { %687 = vmatpush.bf16.msrb.mxu0 %v663_v14 }
  0x76   : > { %1340 = vmatmul.msk.bf16.vlgmr.msrb.gmra.mxu0 %vm272_vm0, %v1484_v15 }
  0x7a   : > { %v917_v25 = vpop.permute.xlu2 %916 }
  0x81   : > { %v379_v17 = vpop.permute.xlu1 %378  ;;  %v463_v18 = vpop.permute.xlu0 %462 }
  0x82   : > { %484 = vmatpush.bf16.msrb.mxu2 %v463_v18  ;;  %400 = vmatpush.bf16.msrb.mxu1 %v379_v17  ;;  %v1001_v34 = vpop.permute.xlu2 %1000 }
  0x86   : > { %1341 = vmatmul.msk.bf16.gmra.mxu0 %vm272_vm0, %v1485_v19 }
  0x89   : > { %v377_v21 = vpop.permute.xlu1 %376  ;;  %v461_v22 = vpop.permute.xlu0 %460 }
  0x8a   : > { %401 = vmatpush.bf16.msrb.mxu1 %v377_v21  ;;  %485 = vmatpush.bf16.msrb.mxu2 %v461_v22 }
  0x8d   : > { %1232 = vmatmul.msk.bf16.vlgmr.msrb.gmra.mxu1 %vm272_vm0, %v1468_v23  ;;  %1260 = vmatmul.msk.bf16.vlgmr.msrb.gmra.mxu2 %vm272_vm0, %v1472_v24 }
  0x8e   : > { %848 = vmatpush.bf16.msra.mxu2 %v463_v18 }
  0x91   : > { %v749_v26 = vpop.permute.xlu1 %748  ;;  %v919_v27 = vpop.permute.xlu0 %918 }
  0x92   : > { %849 = vmatpush.bf16.msra.mxu2 %v461_v22  ;;  %770 = vmatpush.bf16.msra.mxu1 %v749_v26 }
  0x93   : > { %940 = vmatpush.bf16.msra.mxu3 %v919_v27 }
  0x96   : > { %1342 = vmatmul.msk.bf16.gmra.mxu0 %vm272_vm0, %v1486_v28  ;;  %v299_v59 = vpop.f32.mrf.mxu1 }
  0x97   : > { %941 = vmatpush.bf16.msra.mxu3 %v917_v25  ;;  %v294_v53 = vpop.f32.mrf.mxu0 }
  0x99   : > { %v1003_v30 = vpop.permute.xlu1 %1002  ;;  %v747_v33 = vpop.permute.xlu0 %746 }
  0x9a   : > { %1024 = vmatpush.bf16.msra.mxu0 %v1003_v30  ;;  %771 = vmatpush.bf16.msra.mxu1 %v747_v33  ;;  %v1778_v30 = vld [vmem:[%s1911_s4] ss:$0 sm:$0xff] }
  0x9b   : > { %1424 = vmatmul.msk.bf16.vlgmr.msra.gmra.mxu3 %vm272_vm0, %v1496_v36  ;;  %v1733_v63 = vpop.f32.mrf.mxu2 }
  0x9d   : > { %1233 = vmatmul.msk.bf16.gmra.mxu1 %vm272_vm0, %v1469_v31  ;;  %1261 = vmatmul.msk.bf16.gmra.mxu2 %vm272_vm0, %v1473_v32  ;;  %v1709_v51 = vpop.f32.mrf.mxu3  ;;  %v317_v32 = vmul.f32 %v1778_v30, %v294_v53  ;;  %v319_v53 = vmul.f32 %v1778_v30, %v299_v59 }
  0x9e   : > { %1025 = vmatpush.bf16.msra.mxu0 %v1001_v34  ;;  %v1735_v1 = vpop.f32.mrf.mxu1 }
  0x9f   : > { %v296_v57 = vpop.f32.mrf.mxu0 }
  0xa3   : > { %v1737_v3 = vpop.f32.mrf.mxu2 }
  0xa5   : > { %v1721_v56 = vpop.f32.mrf.mxu3 }
  0xa6   : > { %1343 = vmatmul.msk.bf16.gmra.mxu0 %vm272_vm0, %v1487_v35 }
  0xab   : > { %1425 = vmatmul.msk.bf16.gmra.mxu3 %vm272_vm0, %v1497_v40  ;;  %v318_v40 = vmul.f32 %v1778_v30, %v296_v57  ;;  %v1055_v57 = vld [vmem:[%s1909_s2] sm:$0xff] }
  0xad   : > { %1234 = vmatmul.msk.bf16.gmra.mxu1 %vm272_vm0, %v1470_v37  ;;  %1262 = vmatmul.msk.bf16.gmra.mxu2 %vm272_vm0, %v1474_v38  ;;  %v582_v58 = vpop.f32.mrf.mxu3 }
  0xae   : > { %v602_v36 = vmul.f32 %v1778_v30, %v582_v58 }
  0xb5   : > { %v584_v0 = vpop.f32.mrf.mxu3 }
  0xb6   : > { %1452 = vmatmul.msk.bf16.vlgmr.msra.gmra.mxu0 %vm272_vm0, %v1500_v39 }
  0xbb   : > { %1426 = vmatmul.msk.bf16.gmra.mxu3 %vm272_vm0, %v1498_v44 }
  0xbd   : > { %1235 = vmatmul.msk.bf16.gmra.mxu1 %vm272_vm0, %v1471_v41  ;;  %1263 = vmatmul.msk.bf16.gmra.mxu2 %vm272_vm0, %v1475_v42  ;;  %v587_v5 = vpop.f32.mrf.mxu3 }
  0xc5   : > { %v1741_v9 = vpop.f32.mrf.mxu3 }
  0xc6   : > { %1453 = vmatmul.msk.bf16.gmra.mxu0 %vm272_vm0, %v1501_v43 }
  0xcb   : > { %1427 = vmatmul.msk.bf16.gmra.mxu3 %vm272_vm0, %v1499_v48 }
  0xcd   : > { %1368 = vmatmul.msk.bf16.vlgmr.msra.gmra.mxu1 %vm272_vm0, %v1488_v45  ;;  %1396 = vmatmul.msk.bf16.vlgmr.msra.gmra.mxu2 %vm272_vm0, %v1492_v46  ;;  %v1745_v13 = vpop.f32.mrf.mxu3 }
  0xd5   : > { %v1751_v18 = vpop.f32.mrf.mxu3 }
  0xd6   : > { %1454 = vmatmul.msk.bf16.gmra.mxu0 %vm272_vm0, %v1502_v47  ;;  %v603_v47 = vmul.f32 %v1778_v30, %v584_v0  ;;  %v604_v0 = vmul.f32 %v1778_v30, %v587_v5 }
  0xdd   : > { %1369 = vmatmul.msk.bf16.gmra.mxu1 %vm272_vm0, %v1489_v49  ;;  %1397 = vmatmul.msk.bf16.gmra.mxu2 %vm272_vm0, %v1493_v50  ;;  %v1761_v23 = vpop.f32.mrf.mxu3 }
  0xe5   : > { %v1769_v27 = vpop.f32.mrf.mxu3 }
  0xe6   : > { %1455 = vmatmul.msk.bf16.gmra.mxu0 %vm272_vm0, %v1503_v52 }
  0xed   : > { %1370 = vmatmul.msk.bf16.gmra.mxu1 %vm272_vm0, %v1490_v54  ;;  %1398 = vmatmul.msk.bf16.gmra.mxu2 %vm272_vm0, %v1494_v55 }
  0xf3   : > { %v689_v60 = vpop.f32.mrf.mxu0 }
  0xfb   : > { %v691_v2 = vpop.f32.mrf.mxu0 }
  0xfd   : > { %1371 = vmatmul.msk.bf16.gmra.mxu1 %vm272_vm0, %v1491_v61  ;;  %1399 = vmatmul.msk.bf16.gmra.mxu2 %vm272_vm0, %v1495_v62 }
 0x103   : > { %v1739_v6 = vpop.f32.mrf.mxu0 }
 0x10a   : > { %v403_v4 = vpop.f32.mrf.mxu1 }
 0x10b   : > { %v1743_v10 = vpop.f32.mrf.mxu0  ;;  %v423_v33 = vadd.f32 %v403_v4, %v317_v32 }
 0x110   : > { %v487_v7 = vpop.f32.mrf.mxu2 }
 0x111   : > { %v507_v35 = vadd.f32 %v487_v7, %v423_v33  ;;  %v1071_v7 = vld [vmem:[%s1910_s3] sm:$0xff] }
 0x112   : > { %v405_v8 = vpop.f32.mrf.mxu1 }
 0x113   : > { %v1747_v15 = vpop.f32.mrf.mxu0  ;;  %v610_v41 = vadd.f32 %v602_v36, %v507_v35  ;;  %v424_v42 = vadd.f32 %v405_v8, %v318_v40  ;;  %v1056_v40 = vld [vmem:[%s1909_s2 + $0x8] sm:$0xff] }
 0x115   : > { %v709_v43 = vadd.f32 %v689_v60, %v610_v41 }
 0x118   : > { %v489_v11 = vpop.f32.mrf.mxu2 }
 0x119   : > { %v508_v44 = vadd.f32 %v489_v11, %v424_v42 }
 0x11a   : > { %v408_v12 = vpop.f32.mrf.mxu1 }
 0x11b   : > { %v1755_v20 = vpop.f32.mrf.mxu0  ;;  %v611_v54 = vadd.f32 %v603_v47, %v508_v44  ;;  %v425_v58 = vadd.f32 %v408_v12, %v319_v53 }
 0x11d   : > { %v710_v60 = vadd.f32 %v691_v2, %v611_v54 }
 0x11e   : > { %v943_v34 = vpop.f32.mrf.mxu3 }
 0x120   : > { %v492_v14 = vpop.f32.mrf.mxu2 }
 0x121   : > { %v509_v62 = vadd.f32 %v492_v14, %v425_v58 }
 0x122   : > { %v410_v16 = vpop.f32.mrf.mxu1 }
 0x123   : > { %v1763_v24 = vpop.f32.mrf.mxu0  ;;  %v612_v35 = vadd.f32 %v604_v0, %v509_v62 }
 0x126   : > { %v945_v46 = vpop.f32.mrf.mxu3 }
 0x128   : > { %v1749_v17 = vpop.f32.mrf.mxu2 }
 0x12a   : > { %v1753_v19 = vpop.f32.mrf.mxu1 }
 0x12b   : > { %v1771_v28 = vpop.f32.mrf.mxu0 }
 0x12e   : > { %v948_v33 = vpop.f32.mrf.mxu3 }
 0x130   : > { %v1757_v21 = vpop.f32.mrf.mxu2 }
 0x132   : > { %v1759_v22 = vpop.f32.mrf.mxu1 }
 0x133   : > { %v1027_v38 = vpop.f32.mrf.mxu0 }
 0x138   : > { %v1765_v25 = vpop.f32.mrf.mxu2 }
 0x13a   : > { %v1767_v26 = vpop.f32.mrf.mxu1 }
 0x13b   : > { %v1029_v52 = vpop.f32.mrf.mxu0 }
 0x140   : > { %v1773_v29 = vpop.f32.mrf.mxu2 }
 0x142   : > { %v1780_v31 = vpop.f32.mrf.mxu1 }
 0x143   : > { %v1032_v5 = vpop.f32.mrf.mxu0 }
 0x148   : > { %v1784_v37 = vpop.f32.mrf.mxu2 }
 0x14a   : > { %v773_v39 = vpop.f32.mrf.mxu1 }
 0x14b   : > { %v793_v48 = vadd.f32 %v773_v39, %v709_v43  ;;  %v1072_v43 = vld [vmem:[%s1910_s3 + $0x8] sm:$0xff]  ;;  %v1034_v58 = vpop.f32.mrf.mxu0 }
 0x150   : > { %v851_v45 = vpop.f32.mrf.mxu2 }
 0x151   : > { %v871_v49 = vmul.f32 %v1778_v30, %v851_v45 }
 0x152   : > { %v775_v50 = vpop.f32.mrf.mxu1 }
 0x153   : > { %v879_v55 = vadd.f32 %v871_v49, %v793_v48  ;;  %v794_v59 = vadd.f32 %v775_v50, %v710_v60 }
 0x155   : > { %v963_v61 = vadd.f32 %v943_v34, %v879_v55  ;;  %v320_v34 = vmul.f32 %v1778_v30, %v1735_v1  ;;  %v711_v1 = vadd.f32 %v1739_v6, %v612_v35  ;;  %v321_v6 = vmul.f32 %v1778_v30, %v1733_v63 }
 0x156   : > { %v606_v63 = vmul.f32 %v1778_v30, %v1745_v13 }
 0x157   : > { %v1047_v4 = vadd.f32 %v1027_v38, %v963_v61  ;;  %v426_v36 = vadd.f32 %v410_v16, %v320_v34  ;;  %v605_v16 = vmul.f32 %v1778_v30, %v1741_v9  ;;  %v427_v53 = vadd.f32 %v1753_v19, %v321_v6  ;;  %v1057_v9 = vld [vmem:[%s1909_s2 + $0x10] sm:$0xff] }
 0x158   : > { %v853_v8 = vpop.f32.mrf.mxu2  ;;  %v1073_v19 = vld [vmem:[%s1910_s3 + $0x10] sm:$0xff] }
 0x159   : > { %v1063_v11 = vmul.f32 %v1055_v57, %v1047_v4  ;;  %v872_v12 = vmul.f32 %v1778_v30, %v853_v8  ;;  %v510_v41 = vadd.f32 %v1749_v17, %v426_v36  ;;  %v511_v57 = vadd.f32 %v1757_v21, %v427_v53 }
 0x15a   : > { %v778_v32 = vpop.f32.mrf.mxu1  ;;  %v607_v36 = vmul.f32 %v1778_v30, %v1751_v18  ;;  %v1059_v18 = vld [vmem:[%s1909_s2 + $0x20] sm:$0xff] }
 0x15b   : > { %v1079_v2 = vadd.f32 %v1071_v7, %v1063_v11  ;;  %v880_v14 = vadd.f32 %v872_v12, %v794_v59  ;;  %v795_v45 = vadd.f32 %v778_v32, %v711_v1  ;;  %v613_v17 = vadd.f32 %v605_v16, %v510_v41 }
 0x15c   : > { %v614_v21 = vadd.f32 %v606_v63, %v511_v57 }
 0x15d   : > { %v1087_v38 = vmax.f32 %v1079_v2, 0.0  ;;  %v964_v39 = vadd.f32 %v945_v46, %v880_v14  ;;  %v712_v61 = vadd.f32 %v1743_v10, %v613_v17  ;;  %v322_v10 = vmul.f32 %v1778_v30, %v1737_v3  ;;  %v1074_v3 = vld [vmem:[%s1910_s3 + $0x18] sm:$0xff] }
 0x15e   : > { %v713_v35 = vadd.f32 %v1747_v15, %v614_v21 }
 0x15f   : > { %1096 = vst.msk [vmem:[%s1805_s15] sm:$0xff] %vm1095_vm1, %v1087_v38  ;;  %v1048_v42 = vadd.f32 %v1029_v52, %v964_v39  ;;  %v950_v52 = vpop.f32.mrf.mxu3  ;;  %v428_v11 = vadd.f32 %v1759_v22, %v322_v10  ;;  %v1037_v22 = vpop.f32.mrf.mxu0 }
 0x160   : > { %v856_v44 = vpop.f32.mrf.mxu2 }
 0x161   : > { %v1064_v46 = vmul.f32 %v1056_v40, %v1048_v42  ;;  %v873_v47 = vmul.f32 %v1778_v30, %v856_v44  ;;  %v512_v2 = vadd.f32 %v1765_v25, %v428_v11  ;;  %v323_v25 = vmul.f32 %v1778_v30, %v1709_v51  ;;  %v1061_v11 = vld [vmem:[%s1909_s2 + $0x30] sm:$0xff] }
 0x162   : > { %v780_v48 = vpop.f32.mrf.mxu1 }
 0x163   : > { %v1080_v49 = vadd.f32 %v1072_v43, %v1064_v46  ;;  %v881_v50 = vadd.f32 %v873_v47, %v795_v45  ;;  %v796_v0 = vadd.f32 %v780_v48, %v712_v61  ;;  %v615_v1 = vadd.f32 %v607_v36, %v512_v2  ;;  %v1060_v61 = vld [vmem:[%s1909_s2 + $0x28] sm:$0xff] }
 0x164   : > { %v429_v43 = vadd.f32 %v1767_v26, %v323_v25  ;;  %v608_v47 = vmul.f32 %v1778_v30, %v1761_v23  ;;  %v1075_v26 = vld [vmem:[%s1910_s3 + $0x20] sm:$0xff] }
 0x165   : > { %v1088_v54 = vmax.f32 %v1080_v49, 0.0  ;;  %v965_v55 = vadd.f32 %v948_v33, %v881_v50  ;;  %v1058_v33 = vld [vmem:[%s1909_s2 + $0x18] sm:$0xff]  ;;  %v714_v45 = vadd.f32 %v1755_v20, %v615_v1 }
 0x166   : > { %v513_v46 = vadd.f32 %v1773_v29, %v429_v43  ;;  %v324_v29 = vmul.f32 %v1778_v30, %v1721_v56  ;;  %v1076_v56 = vld [vmem:[%s1910_s3 + $0x28] sm:$0xff] }
 0x167   : > { %1097 = vst.msk [vmem:[%s1805_s15 + $0x8] sm:$0xff] %vm1095_vm1, %v1088_v54  ;;  %v1049_v60 = vadd.f32 %v1032_v5, %v965_v55  ;;  %v953_v34 = vpop.f32.mrf.mxu3  ;;  %v1039_v20 = vpop.f32.mrf.mxu0 }
 0x168   : > { %v858_v62 = vpop.f32.mrf.mxu2  ;;  %v430_v55 = vadd.f32 %v1780_v31, %v324_v29  ;;  %v609_v31 = vmul.f32 %v1778_v30, %v1769_v27 }
 0x169   : > { %v1065_v4 = vmul.f32 %v1057_v9, %v1049_v60  ;;  %v874_v7 = vmul.f32 %v1778_v30, %v858_v62 }
 0x16a   : > { %v783_v8 = vpop.f32.mrf.mxu1  ;;  %v514_v63 = vadd.f32 %v1784_v37, %v430_v55 }
 0x16b   : > { %v1081_v59 = vadd.f32 %v1073_v19, %v1065_v4  ;;  %v882_v13 = vadd.f32 %v874_v7, %v796_v0  ;;  %v797_v38 = vadd.f32 %v783_v8, %v713_v35 }
 0x16d   : > { %v1089_v12 = vmax.f32 %v1081_v59, 0.0  ;;  %v966_v32 = vadd.f32 %v950_v52, %v882_v13  ;;  %v616_v52 = vadd.f32 %v608_v47, %v513_v46 }
 0x16f   : > { %1098 = vst.msk [vmem:[%s1805_s15 + $0x10] sm:$0xff] %vm1095_vm1, %v1089_v12  ;;  %v1050_v14 = vadd.f32 %v1034_v58, %v966_v32  ;;  %v955_v6 = vpop.f32.mrf.mxu3  ;;  %v715_v57 = vadd.f32 %v1763_v24, %v616_v52  ;;  %v617_v24 = vadd.f32 %v609_v31, %v514_v63  ;;  %v1042_v10 = vpop.f32.mrf.mxu0  ;;  %v1077_v32 = vld [vmem:[%s1910_s3 + $0x30] sm:$0xff] }
 0x170   : > { %v861_v5 = vpop.f32.mrf.mxu2 }
 0x171   : > { %v1066_v39 = vmul.f32 %v1058_v33, %v1050_v14  ;;  %v875_v40 = vmul.f32 %v1778_v30, %v861_v5  ;;  %v716_v12 = vadd.f32 %v1771_v28, %v617_v24  ;;  %v1062_v28 = vld [vmem:[%s1909_s2 + $0x38] sm:$0xff] }
 0x172   : > { %v785_v15 = vpop.f32.mrf.mxu1 }
 0x173   : > { %v1082_v41 = vadd.f32 %v1074_v3, %v1066_v39  ;;  %v883_v42 = vadd.f32 %v875_v40, %v797_v38  ;;  %v798_v17 = vadd.f32 %v785_v15, %v714_v45  ;;  %v1078_v40 = vld [vmem:[%s1910_s3 + $0x38] sm:$0xff] }
 0x175   : > { %v1090_v44 = vmax.f32 %v1082_v41, 0.0  ;;  %v967_v16 = vadd.f32 %v953_v34, %v883_v42 }
 0x177   : > { %1099 = vst.msk [vmem:[%s1805_s15 + $0x18] sm:$0xff] %vm1095_vm1, %v1090_v44  ;;  %v1051_v51 = vadd.f32 %v1037_v22, %v967_v16  ;;  %v958_v7 = vpop.f32.mrf.mxu3  ;;  %v1044_v38 = vpop.f32.mrf.mxu0 }
 0x178   : > { %v863_v48 = vpop.f32.mrf.mxu2 }
 0x179   : > { %v1067_v49 = vmul.f32 %v1059_v18, %v1051_v51  ;;  %v876_v50 = vmul.f32 %v1778_v30, %v863_v48 }
 0x17a   : > { %v788_v54 = vpop.f32.mrf.mxu1 }
 0x17b   : > { %v1083_v23 = vadd.f32 %v1075_v26, %v1067_v49  ;;  %v884_v53 = vadd.f32 %v876_v50, %v798_v17  ;;  %v799_v62 = vadd.f32 %v788_v54, %v715_v57 }
 0x17d   : > { %v1091_v9 = vmax.f32 %v1083_v23, 0.0  ;;  %v968_v58 = vadd.f32 %v955_v6, %v884_v53 }
 0x17f   : > { %1100 = vst.msk [vmem:[%s1805_s15 + $0x20] sm:$0xff] %vm1095_vm1, %v1091_v9  ;;  %v1052_v60 = vadd.f32 %v1039_v20, %v968_v58  ;;  %v960_v5 = vpop.f32.mrf.mxu3 }
 0x180   : > { %v866_v19 = vpop.f32.mrf.mxu2 }
 0x181   : > { %v1068_v0 = vmul.f32 %v1060_v61, %v1052_v60  ;;  %v877_v4 = vmul.f32 %v1778_v30, %v866_v19 }
 0x182   : > { %v790_v13 = vpop.f32.mrf.mxu1 }
 0x183   : > { %v1084_v8 = vadd.f32 %v1076_v56, %v1068_v0  ;;  %v885_v37 = vadd.f32 %v877_v4, %v799_v62  ;;  %v800_v34 = vadd.f32 %v790_v13, %v716_v12 }
 0x185   : > { %v1092_v21 = vmax.f32 %v1084_v8, 0.0  ;;  %v969_v59 = vadd.f32 %v958_v7, %v885_v37 }
 0x187   : > { %1101 = vst.msk [vmem:[%s1805_s15 + $0x28] sm:$0xff] %vm1095_vm1, %v1092_v21  ;;  %v1053_v27 = vadd.f32 %v1042_v10, %v969_v59 }
 0x188   : > { %v868_v33 = vpop.f32.mrf.mxu2 }
 0x189   : > { %v1069_v35 = vmul.f32 %v1061_v11, %v1053_v27  ;;  %v878_v2 = vmul.f32 %v1778_v30, %v868_v33 }
 0x18b   : > { %v1085_v14 = vadd.f32 %v1077_v32, %v1069_v35  ;;  %v886_v3 = vadd.f32 %v878_v2, %v800_v34 }
 0x18d   : > { %v1093_v22 = vmax.f32 %v1085_v14, 0.0  ;;  %v970_v36 = vadd.f32 %v960_v5, %v886_v3 }
 0x18f   : > { %1102 = vst.msk [vmem:[%s1805_s15 + $0x30] sm:$0xff] %vm1095_vm1, %v1093_v22  ;;  %v1054_v39 = vadd.f32 %v1044_v38, %v970_v36 }
 0x191   : > { %v1070_v15 = vmul.f32 %v1062_v28, %v1054_v39 }
 0x193   : > { %v1086_v25 = vadd.f32 %v1078_v40, %v1070_v15 }
 0x195   : > { %v1094_v30 = vmax.f32 %v1086_v25, 0.0 }
 0x197   : > { %1103 = vst.msk [vmem:[%s1805_s15 + $0x38] sm:$0xff] %vm1095_vm1, %v1094_v30 }
 0x198 PF: > { %s15_s18 = sadd.s32 1, %s1527_s18  }
 0x199   : > { %p12_p4 = scmp.ge.s32.totalorder %s15_s18, 4  }
 0x19b   :  { %14 = sbr.rel (!%p12_p4) target bundleno = 1 (0x1), region = 81 }

</bundles_post_ra>
